<compile_context>
chip_gen: v7x
topology: tpu7x:2x2x1
jax: 0.10.0
libtpu: 0.0.40
codegen_flags: <defaults>
</compile_context>

<pallas_src>
from functools import partial

import numpy as np
import jax
import jax.numpy as jnp
from jax import lax
from jax.experimental import pallas as pl
from jax.experimental.pallas import tpu as pltpu

# ---- model dims (from DialogModel.__init__) ----
VOCAB_WORDS = 11000
WORD_DIM = 50
VOCAB_UB = 5
UB_DIM = 10
IN_DIM = WORD_DIM + UB_DIM          # 60 (GRU input size)
HID = 128                           # GRU hidden size
OUT = 3                             # linear output size

# padded sizes used inside the kernel
WORD_PAD = 128                      # word embedding row padded 50 -> 128 lanes
UB_ROWS = 8                         # ub-contribution table padded 5 -> 8 sublanes
PAD_OUT = 128                       # linear output padded 3 -> 128 lanes
OUT_ROWS = 8                        # packed output slab rows (h / logits / logp / zero pad)
SEQ_BUCKET = 8                      # sequence-length bucket (avoids per-length recompiles)


def dialog_kernel(seq_len_ref, word_ids_ref, ub_ids_ref,      # SMEM: (1,), (S,), (S,) int32
                  word_tbl_ref,                                # HBM (ANY): (V, 128) f32
                  ub_ctr_ref,                                  # VMEM f32 (8, 3H): ub_emb @ W_ih_ub^T
                  wih_word_ref, b_x_ref,                       # VMEM bf16 (128,3H), f32 (1,3H)
                  whh_ref, b_hn_ref, h0_ref,                   # VMEM bf16 (H,3H), f32 (1,H), f32 (1,H)
                  wlin_ref, blin_ref,                          # VMEM bf16 (H,128), f32 (1,128)
                  out_ref,                                     # VMEM f32 (8,128) packed output slab
                  xw_ref, sem):                                # scratch: VMEM f32 (S,128), DMA sem
    S = xw_ref.shape[0]

    # ---- 1) issue all word-row gather DMAs (HBM -> VMEM), one shared semaphore ----
    # padding_idx=0 rows (and bucket-padding ids) are zero rows, matching nn.Embedding(padding_idx=0).
    copies = []
    for t in range(S):
        wid = word_ids_ref[t]
        cp = pltpu.make_async_copy(word_tbl_ref.at[pl.ds(wid, 1), :],
                                   xw_ref.at[pl.ds(t, 1), :], sem)
        cp.start()
        copies.append(cp)

    # ---- 2) overlap the DMA latency with independent setup work ----
    seq_len = seq_len_ref[0]
    # in-VMEM gather of the precomputed ub contribution rows (one dynamic sublane slice per step)
    ub_rows = [ub_ctr_ref[pl.ds(ub_ids_ref[t], 1), :] for t in range(S)]
    x_ub = jnp.concatenate(ub_rows, axis=0)                    # (S, 3H) f32
    b_hn = b_hn_ref[...]                                       # (1, H)
    h = h0_ref[...]                                            # (1, H) f32
    # gh for step 0 depends only on h0 / W_hh -> compute it before waiting on the gathers
    gh = jnp.dot(h.astype(jnp.bfloat16), whh_ref[...],
                 preferred_element_type=jnp.float32)           # (1, 3H)

    # ---- 3) wait for the word-row gathers, then one batched input projection ----
    for cp in copies:
        cp.wait()
    # xp = word_emb @ W_ih_word^T + (b_ih + [b_hr | b_hz | 0]) + ub_emb @ W_ih_ub^T
    xp = (jnp.dot(xw_ref[...].astype(jnp.bfloat16), wih_word_ref[...],
                  preferred_element_type=jnp.float32)
          + b_x_ref[...] + x_ub)                               # (S, 3H) f32, kept as a live value

    # ---- 4) GRU recurrence, fully unrolled (PyTorch gate order r, z, n), masked past seq_len ----
    for t in range(S):
        gx = xp[t:t + 1, :]                                    # (1, 3H)
        r = jax.nn.sigmoid(gx[:, 0:HID] + gh[:, 0:HID])
        z = jax.nn.sigmoid(gx[:, HID:2 * HID] + gh[:, HID:2 * HID])
        n = jnp.tanh(gx[:, 2 * HID:] + r * (gh[:, 2 * HID:] + b_hn))
        h_new = (1.0 - z) * n + z * h
        h = jnp.where(t < seq_len, h_new, h)                   # bucket-padding steps are no-ops
        if t + 1 < S:
            gh = jnp.dot(h.astype(jnp.bfloat16), whh_ref[...],
                         preferred_element_type=jnp.float32)

    # ---- 5) linear head + masked log-softmax; pack h/logits/logp into one (8,128) slab ----
    logits = (jnp.dot(h.astype(jnp.bfloat16), wlin_ref[...],
                      preferred_element_type=jnp.float32)
              + blin_ref[...])                                 # (1, 128); real values in lanes 0..2
    lane = lax.broadcasted_iota(jnp.int32, logits.shape, 1)
    masked = jnp.where(lane < OUT, logits, -1e30)              # large finite negative (NaN-safe pad)
    m = jnp.max(masked, axis=-1, keepdims=True)
    lse = jnp.log(jnp.sum(jnp.exp(masked - m), axis=-1, keepdims=True))
    logp = masked - m - lse
    pad_rows = jnp.zeros((OUT_ROWS - 3, PAD_OUT), jnp.float32)
    out_ref[...] = jnp.concatenate([h, logits, logp, pad_rows], axis=0)   # one unmasked full-tile store


def run_dialog_kernel(seq_len, word_ids, ub_ids, params):
    """seq_len: (1,) int32; word_ids/ub_ids: (S_pad,) int32 with S_pad a multiple of 8.
    Returns an (8, 128) f32 slab: row 0 = h, row 1 = padded logits, row 2 = padded log-probs."""
    S = word_ids.shape[0]
    vmem = pl.BlockSpec(memory_space=pltpu.MemorySpace.VMEM)
    smem = pl.BlockSpec(memory_space=pltpu.MemorySpace.SMEM)
    hbm = pl.BlockSpec(memory_space=pl.ANY)

    return pl.pallas_call(
        dialog_kernel,
        out_shape=jax.ShapeDtypeStruct((OUT_ROWS, PAD_OUT), jnp.float32),
        in_specs=[smem, smem, smem, hbm] + [vmem] * 8,
        out_specs=vmem,
        scratch_shapes=[
            pltpu.VMEM((S, WORD_PAD), jnp.float32),    # gathered word-embedding rows
            pltpu.SemaphoreType.DMA,                   # one shared DMA semaphore for all row copies
        ],
    )(
        seq_len, word_ids, ub_ids,
        params["word_tbl_pad"],
        params["ub_contrib_pad"],
        params["w_ih_word_pad"], params["b_x"],
        params["w_hh_bf16"], params["b_hn"], params["h0"],
        params["w_lin_pad"], params["b_lin_pad"],
    )


@partial(jax.jit, static_argnames=("calc_softmax",))
def dialog_forward(input_ids, params, calc_softmax=False):
    """input_ids: (1, 2, S) int32 (batch must be 1, as the torch .view(seq, 1, feat) requires)."""
    S = input_ids.shape[-1]
    S_pad = max(SEQ_BUCKET, ((S + SEQ_BUCKET - 1) // SEQ_BUCKET) * SEQ_BUCKET)
    word_ids = input_ids[:, 0, :].reshape(-1).astype(jnp.int32)
    ub_ids = input_ids[:, 1, :].reshape(-1).astype(jnp.int32)
    word_ids = jnp.pad(word_ids, (0, S_pad - S))       # pad ids -> row 0 (zero / padding_idx row)
    ub_ids = jnp.pad(ub_ids, (0, S_pad - S))
    seq_len = jnp.full((1,), S, jnp.int32)

    out = run_dialog_kernel(seq_len, word_ids, ub_ids, params)
    hidden = out[0:1, :].reshape(1, 1, HID)
    head = out[2:3, :OUT] if calc_softmax else out[1:2, :OUT]
    return hidden, head


def init_params(key):
    ks = jax.random.split(key, 8)
    inv_h = 1.0 / np.sqrt(HID)

    word_emb = jax.random.normal(ks[0], (VOCAB_WORDS, WORD_DIM), jnp.float32)
    word_emb = word_emb.at[0].set(0.0)                 # padding_idx=0
    ub_emb = jax.random.normal(ks[1], (VOCAB_UB, UB_DIM), jnp.float32)
    ub_emb = ub_emb.at[0].set(0.0)                     # padding_idx=0

    w_ih = jax.random.uniform(ks[2], (3 * HID, IN_DIM), jnp.float32, -inv_h, inv_h)
    w_hh = jax.random.uniform(ks[3], (3 * HID, HID), jnp.float32, -inv_h, inv_h)
    b_ih = jax.random.uniform(ks[4], (3 * HID,), jnp.float32, -inv_h, inv_h)
    b_hh = jax.random.uniform(ks[5], (3 * HID,), jnp.float32, -inv_h, inv_h)
    w_lin = jax.random.uniform(ks[6], (OUT, HID), jnp.float32, -inv_h, inv_h)
    b_lin = jax.random.uniform(ks[7], (OUT,), jnp.float32, -inv_h, inv_h)

    params = {
        # raw PyTorch-layout params (used by the pure-JAX reference)
        "word_emb": word_emb, "ub_emb": ub_emb,
        "w_ih_t": w_ih.T, "w_hh_t": w_hh.T,
        "b_ih": b_ih.reshape(1, 3 * HID), "b_hh": b_hh.reshape(1, 3 * HID),
        "w_lin_t": w_lin.T, "b_lin": b_lin.reshape(1, OUT),
        "h0": jnp.zeros((1, HID), jnp.float32),        # init_hidden()
    }

    # ---- kernel-side packed / lane-padded / bf16 params ----
    word_tbl_pad = jnp.zeros((VOCAB_WORDS, WORD_PAD), jnp.float32).at[:, :WORD_DIM].set(word_emb)

    w_ih_word_pad = (jnp.zeros((WORD_PAD, 3 * HID), jnp.float32)
                     .at[:WORD_DIM].set(w_ih[:, :WORD_DIM].T)).astype(jnp.bfloat16)

    # precomputed per-id user/bot contribution to the input projection (bf16 operands, f32 acc)
    ub_contrib = jnp.dot(ub_emb.astype(jnp.bfloat16),
                         w_ih[:, WORD_DIM:].T.astype(jnp.bfloat16),
                         preferred_element_type=jnp.float32)            # (5, 3H)
    ub_contrib_pad = jnp.zeros((UB_ROWS, 3 * HID), jnp.float32).at[:VOCAB_UB].set(ub_contrib)

    w_hh_bf16 = w_hh.T.astype(jnp.bfloat16)
    w_lin_pad = (jnp.zeros((HID, PAD_OUT), jnp.float32)
                 .at[:, :OUT].set(w_lin.T)).astype(jnp.bfloat16)
    b_lin_pad = jnp.zeros((1, PAD_OUT), jnp.float32).at[0, :OUT].set(b_lin)

    # fold the r/z thirds of b_hh into the one-shot input-projection bias; keep b_hn separate
    b_x = (b_ih + jnp.concatenate([b_hh[:2 * HID], jnp.zeros((HID,), jnp.float32)])
           ).reshape(1, 3 * HID)
    b_hn = b_hh[2 * HID:].reshape(1, HID)

    params.update({
        "word_tbl_pad": word_tbl_pad,
        "ub_contrib_pad": ub_contrib_pad,
        "w_ih_word_pad": w_ih_word_pad,
        "w_hh_bf16": w_hh_bf16, "b_x": b_x, "b_hn": b_hn,
        "w_lin_pad": w_lin_pad, "b_lin_pad": b_lin_pad,
    })
    return params


def reference_forward(input_ids, params, calc_softmax=False):
    """Pure-JAX reference replicating the torch semantics with the same bf16-operand matmuls."""
    word_emb = params["word_emb"][input_ids[:, 0, :]]
    ub_emb = params["ub_emb"][input_ids[:, 1, :]]
    x = jnp.concatenate([word_emb, ub_emb], axis=2).reshape(-1, IN_DIM)

    w_ih_t = params["w_ih_t"].astype(jnp.bfloat16)
    w_hh_t = params["w_hh_t"].astype(jnp.bfloat16)
    w_lin_t = params["w_lin_t"].astype(jnp.bfloat16)

    def step(h, xt):
        gx = jnp.dot(xt.astype(jnp.bfloat16), w_ih_t,
                     preferred_element_type=jnp.float32) + params["b_ih"][0]
        gh = jnp.dot(h.astype(jnp.bfloat16), w_hh_t,
                     preferred_element_type=jnp.float32) + params["b_hh"][0]
        r = jax.nn.sigmoid(gx[:HID] + gh[:HID])
        z = jax.nn.sigmoid(gx[HID:2 * HID] + gh[HID:2 * HID])
        n = jnp.tanh(gx[2 * HID:] + r * gh[2 * HID:])
        return (1.0 - z) * n + z * h, None

    h, _ = lax.scan(step, params["h0"][0], x)
    logits = (jnp.dot(h.astype(jnp.bfloat16), w_lin_t,
                      preferred_element_type=jnp.float32)
              + params["b_lin"][0]).reshape(1, OUT)
    if calc_softmax:
        return h.reshape(1, 1, HID), jax.nn.log_softmax(logits, axis=-1)
    return h.reshape(1, 1, HID), logits


if __name__ == "__main__":
    root = jax.random.PRNGKey(0)
    kp, ki = jax.random.split(root)
    params = init_params(kp)

    S = 6  # true sequence length (non-multiple of 8, exercises the bucket-padding/masking path)
    k1, k2 = jax.random.split(ki)
    word_ids = jax.random.randint(k1, (1, S), 1, VOCAB_WORDS, jnp.int32)
    ub_ids = jax.random.randint(k2, (1, S), 1, VOCAB_UB, jnp.int32)
    input_ids = jnp.stack([word_ids, ub_ids], axis=1)  # (1, 2, S)

    hidden, probs = dialog_forward(input_ids, params, calc_softmax=True)
    jax.block_until_ready((hidden, probs))

    # sanity check against a pure-JAX reference (same bf16 operand / f32 accumulate policy)
    hidden_ref, probs_ref = reference_forward(input_ids, params, calc_softmax=True)
    np.testing.assert_allclose(np.asarray(hidden), np.asarray(hidden_ref), atol=2e-3, rtol=2e-3)
    np.testing.assert_allclose(np.asarray(probs), np.asarray(probs_ref), atol=2e-3, rtol=2e-3)

    hidden2, logits2 = dialog_forward(input_ids, params, calc_softmax=False)
    jax.block_until_ready((hidden2, logits2))
    _, logits_ref = reference_forward(input_ids, params, calc_softmax=False)
    np.testing.assert_allclose(np.asarray(logits2), np.asarray(logits_ref), atol=2e-3, rtol=2e-3)

    print("KERNEL_OK")
</pallas_src>

<mosaic_0001>
module attributes {stable_mosaic.version = 11 : i64} {
  func.func @dialog_kernel(%arg0: memref<1xi32, #tpu.memory_space<smem>>, %arg1: memref<8xi32, #tpu.memory_space<smem>>, %arg2: memref<8xi32, #tpu.memory_space<smem>>, %arg3: memref<11000x128xf32, #tpu.memory_space<any>>, %arg4: memref<8x384xf32, #tpu.memory_space<vmem>>, %arg5: memref<128x384xbf16, #tpu.memory_space<vmem>>, %arg6: memref<1x384xf32, #tpu.memory_space<vmem>>, %arg7: memref<128x384xbf16, #tpu.memory_space<vmem>>, %arg8: memref<1x128xf32, #tpu.memory_space<vmem>>, %arg9: memref<1x128xf32, #tpu.memory_space<vmem>>, %arg10: memref<128x128xbf16, #tpu.memory_space<vmem>>, %arg11: memref<1x128xf32, #tpu.memory_space<vmem>>, %arg12: memref<8x128xf32, #tpu.memory_space<vmem>>, %arg13: memref<8x128xf32, #tpu.memory_space<vmem>>, %arg14: memref<!tpu.dma_semaphore, #tpu.memory_space<semaphore_mem>>) attributes {dimension_semantics = [], scalar_prefetch = 0 : i64, scratch_operands = 2 : i64, tpu.core_type = #tpu.core_type<tc>} {
    %c0 = arith.constant 0 : index
    %0 = memref.load %arg1[%c0] : memref<8xi32, #tpu.memory_space<smem>>
    %c0_i32 = arith.constant 0 : i32
    %1 = tpu.memref_slice %arg3[%0, %c0_i32] : memref<11000x128xf32, #tpu.memory_space<any>> -> memref<1x128xf32, #tpu.memory_space<any>>
    %c0_i32_0 = arith.constant 0 : i32
    %c0_i32_1 = arith.constant 0 : i32
    %2 = tpu.memref_slice %arg13[%c0_i32_0, %c0_i32_1] : memref<8x128xf32, #tpu.memory_space<vmem>> -> memref<1x128xf32, #tpu.memory_space<vmem>>
    tpu.enqueue_dma source(%1 : memref<1x128xf32, #tpu.memory_space<any>>) target(%2 : memref<1x128xf32, #tpu.memory_space<vmem>>) target_semaphore(%arg14 : memref<!tpu.dma_semaphore, #tpu.memory_space<semaphore_mem>>)
    %c1 = arith.constant 1 : index
    %3 = memref.load %arg1[%c1] : memref<8xi32, #tpu.memory_space<smem>>
    %c0_i32_2 = arith.constant 0 : i32
    %4 = tpu.memref_slice %arg3[%3, %c0_i32_2] : memref<11000x128xf32, #tpu.memory_space<any>> -> memref<1x128xf32, #tpu.memory_space<any>>
    %c1_i32 = arith.constant 1 : i32
    %c0_i32_3 = arith.constant 0 : i32
    %5 = tpu.memref_slice %arg13[%c1_i32, %c0_i32_3] : memref<8x128xf32, #tpu.memory_space<vmem>> -> memref<1x128xf32, #tpu.memory_space<vmem>>
    tpu.enqueue_dma source(%4 : memref<1x128xf32, #tpu.memory_space<any>>) target(%5 : memref<1x128xf32, #tpu.memory_space<vmem>>) target_semaphore(%arg14 : memref<!tpu.dma_semaphore, #tpu.memory_space<semaphore_mem>>)
    %c2 = arith.constant 2 : index
    %6 = memref.load %arg1[%c2] : memref<8xi32, #tpu.memory_space<smem>>
    %c0_i32_4 = arith.constant 0 : i32
    %7 = tpu.memref_slice %arg3[%6, %c0_i32_4] : memref<11000x128xf32, #tpu.memory_space<any>> -> memref<1x128xf32, #tpu.memory_space<any>>
    %c2_i32 = arith.constant 2 : i32
    %c0_i32_5 = arith.constant 0 : i32
    %8 = tpu.memref_slice %arg13[%c2_i32, %c0_i32_5] : memref<8x128xf32, #tpu.memory_space<vmem>> -> memref<1x128xf32, #tpu.memory_space<vmem>>
    tpu.enqueue_dma source(%7 : memref<1x128xf32, #tpu.memory_space<any>>) target(%8 : memref<1x128xf32, #tpu.memory_space<vmem>>) target_semaphore(%arg14 : memref<!tpu.dma_semaphore, #tpu.memory_space<semaphore_mem>>)
    %c3 = arith.constant 3 : index
    %9 = memref.load %arg1[%c3] : memref<8xi32, #tpu.memory_space<smem>>
    %c0_i32_6 = arith.constant 0 : i32
    %10 = tpu.memref_slice %arg3[%9, %c0_i32_6] : memref<11000x128xf32, #tpu.memory_space<any>> -> memref<1x128xf32, #tpu.memory_space<any>>
    %c3_i32 = arith.constant 3 : i32
    %c0_i32_7 = arith.constant 0 : i32
    %11 = tpu.memref_slice %arg13[%c3_i32, %c0_i32_7] : memref<8x128xf32, #tpu.memory_space<vmem>> -> memref<1x128xf32, #tpu.memory_space<vmem>>
    tpu.enqueue_dma source(%10 : memref<1x128xf32, #tpu.memory_space<any>>) target(%11 : memref<1x128xf32, #tpu.memory_space<vmem>>) target_semaphore(%arg14 : memref<!tpu.dma_semaphore, #tpu.memory_space<semaphore_mem>>)
    %c4 = arith.constant 4 : index
    %12 = memref.load %arg1[%c4] : memref<8xi32, #tpu.memory_space<smem>>
    %c0_i32_8 = arith.constant 0 : i32
    %13 = tpu.memref_slice %arg3[%12, %c0_i32_8] : memref<11000x128xf32, #tpu.memory_space<any>> -> memref<1x128xf32, #tpu.memory_space<any>>
    %c4_i32 = arith.constant 4 : i32
    %c0_i32_9 = arith.constant 0 : i32
    %14 = tpu.memref_slice %arg13[%c4_i32, %c0_i32_9] : memref<8x128xf32, #tpu.memory_space<vmem>> -> memref<1x128xf32, #tpu.memory_space<vmem>>
    tpu.enqueue_dma source(%13 : memref<1x128xf32, #tpu.memory_space<any>>) target(%14 : memref<1x128xf32, #tpu.memory_space<vmem>>) target_semaphore(%arg14 : memref<!tpu.dma_semaphore, #tpu.memory_space<semaphore_mem>>)
    %c5 = arith.constant 5 : index
    %15 = memref.load %arg1[%c5] : memref<8xi32, #tpu.memory_space<smem>>
    %c0_i32_10 = arith.constant 0 : i32
    %16 = tpu.memref_slice %arg3[%15, %c0_i32_10] : memref<11000x128xf32, #tpu.memory_space<any>> -> memref<1x128xf32, #tpu.memory_space<any>>
    %c5_i32 = arith.constant 5 : i32
    %c0_i32_11 = arith.constant 0 : i32
    %17 = tpu.memref_slice %arg13[%c5_i32, %c0_i32_11] : memref<8x128xf32, #tpu.memory_space<vmem>> -> memref<1x128xf32, #tpu.memory_space<vmem>>
    tpu.enqueue_dma source(%16 : memref<1x128xf32, #tpu.memory_space<any>>) target(%17 : memref<1x128xf32, #tpu.memory_space<vmem>>) target_semaphore(%arg14 : memref<!tpu.dma_semaphore, #tpu.memory_space<semaphore_mem>>)
    %c6 = arith.constant 6 : index
    %18 = memref.load %arg1[%c6] : memref<8xi32, #tpu.memory_space<smem>>
    %c0_i32_12 = arith.constant 0 : i32
    %19 = tpu.memref_slice %arg3[%18, %c0_i32_12] : memref<11000x128xf32, #tpu.memory_space<any>> -> memref<1x128xf32, #tpu.memory_space<any>>
    %c6_i32 = arith.constant 6 : i32
    %c0_i32_13 = arith.constant 0 : i32
    %20 = tpu.memref_slice %arg13[%c6_i32, %c0_i32_13] : memref<8x128xf32, #tpu.memory_space<vmem>> -> memref<1x128xf32, #tpu.memory_space<vmem>>
    tpu.enqueue_dma source(%19 : memref<1x128xf32, #tpu.memory_space<any>>) target(%20 : memref<1x128xf32, #tpu.memory_space<vmem>>) target_semaphore(%arg14 : memref<!tpu.dma_semaphore, #tpu.memory_space<semaphore_mem>>)
    %c7 = arith.constant 7 : index
    %21 = memref.load %arg1[%c7] : memref<8xi32, #tpu.memory_space<smem>>
    %c0_i32_14 = arith.constant 0 : i32
    %22 = tpu.memref_slice %arg3[%21, %c0_i32_14] : memref<11000x128xf32, #tpu.memory_space<any>> -> memref<1x128xf32, #tpu.memory_space<any>>
    %c7_i32 = arith.constant 7 : i32
    %c0_i32_15 = arith.constant 0 : i32
    %23 = tpu.memref_slice %arg13[%c7_i32, %c0_i32_15] : memref<8x128xf32, #tpu.memory_space<vmem>> -> memref<1x128xf32, #tpu.memory_space<vmem>>
    tpu.enqueue_dma source(%22 : memref<1x128xf32, #tpu.memory_space<any>>) target(%23 : memref<1x128xf32, #tpu.memory_space<vmem>>) target_semaphore(%arg14 : memref<!tpu.dma_semaphore, #tpu.memory_space<semaphore_mem>>)
    %c0_16 = arith.constant 0 : index
    %24 = memref.load %arg0[%c0_16] : memref<1xi32, #tpu.memory_space<smem>>
    %c0_17 = arith.constant 0 : index
    %25 = memref.load %arg2[%c0_17] : memref<8xi32, #tpu.memory_space<smem>>
    %26 = arith.index_cast %25 : i32 to index
    %c0_18 = arith.constant 0 : index
    %27 = vector.load %arg4[%26, %c0_18] : memref<8x384xf32, #tpu.memory_space<vmem>>, vector<1x384xf32>
    %c1_19 = arith.constant 1 : index
    %28 = memref.load %arg2[%c1_19] : memref<8xi32, #tpu.memory_space<smem>>
    %29 = arith.index_cast %28 : i32 to index
    %c0_20 = arith.constant 0 : index
    %30 = vector.load %arg4[%29, %c0_20] : memref<8x384xf32, #tpu.memory_space<vmem>>, vector<1x384xf32>
    %c2_21 = arith.constant 2 : index
    %31 = memref.load %arg2[%c2_21] : memref<8xi32, #tpu.memory_space<smem>>
    %32 = arith.index_cast %31 : i32 to index
    %c0_22 = arith.constant 0 : index
    %33 = vector.load %arg4[%32, %c0_22] : memref<8x384xf32, #tpu.memory_space<vmem>>, vector<1x384xf32>
    %c3_23 = arith.constant 3 : index
    %34 = memref.load %arg2[%c3_23] : memref<8xi32, #tpu.memory_space<smem>>
    %35 = arith.index_cast %34 : i32 to index
    %c0_24 = arith.constant 0 : index
    %36 = vector.load %arg4[%35, %c0_24] : memref<8x384xf32, #tpu.memory_space<vmem>>, vector<1x384xf32>
    %c4_25 = arith.constant 4 : index
    %37 = memref.load %arg2[%c4_25] : memref<8xi32, #tpu.memory_space<smem>>
    %38 = arith.index_cast %37 : i32 to index
    %c0_26 = arith.constant 0 : index
    %39 = vector.load %arg4[%38, %c0_26] : memref<8x384xf32, #tpu.memory_space<vmem>>, vector<1x384xf32>
    %c5_27 = arith.constant 5 : index
    %40 = memref.load %arg2[%c5_27] : memref<8xi32, #tpu.memory_space<smem>>
    %41 = arith.index_cast %40 : i32 to index
    %c0_28 = arith.constant 0 : index
    %42 = vector.load %arg4[%41, %c0_28] : memref<8x384xf32, #tpu.memory_space<vmem>>, vector<1x384xf32>
    %c6_29 = arith.constant 6 : index
    %43 = memref.load %arg2[%c6_29] : memref<8xi32, #tpu.memory_space<smem>>
    %44 = arith.index_cast %43 : i32 to index
    %c0_30 = arith.constant 0 : index
    %45 = vector.load %arg4[%44, %c0_30] : memref<8x384xf32, #tpu.memory_space<vmem>>, vector<1x384xf32>
    %c7_31 = arith.constant 7 : index
    %46 = memref.load %arg2[%c7_31] : memref<8xi32, #tpu.memory_space<smem>>
    %47 = arith.index_cast %46 : i32 to index
    %c0_32 = arith.constant 0 : index
    %48 = vector.load %arg4[%47, %c0_32] : memref<8x384xf32, #tpu.memory_space<vmem>>, vector<1x384xf32>
    %49 = tpu.concatenate %27, %30, %33, %36, %39, %42, %45, %48 in 0 : vector<1x384xf32>, vector<1x384xf32>, vector<1x384xf32>, vector<1x384xf32>, vector<1x384xf32>, vector<1x384xf32>, vector<1x384xf32>, vector<1x384xf32> -> vector<8x384xf32>
    %c0_33 = arith.constant 0 : index
    %c0_34 = arith.constant 0 : index
    %50 = vector.load %arg8[%c0_33, %c0_34] : memref<1x128xf32, #tpu.memory_space<vmem>>, vector<1x128xf32>
    %c0_35 = arith.constant 0 : index
    %c0_36 = arith.constant 0 : index
    %51 = vector.load %arg9[%c0_35, %c0_36] : memref<1x128xf32, #tpu.memory_space<vmem>>, vector<1x128xf32>
    %52 = arith.truncf %51 : vector<1x128xf32> to vector<1x128xbf16>
    %c0_37 = arith.constant 0 : index
    %c0_38 = arith.constant 0 : index
    %53 = vector.load %arg7[%c0_37, %c0_38] : memref<128x384xbf16, #tpu.memory_space<vmem>>, vector<128x384xbf16>
    %cst = arith.constant dense<0.000000e+00> : vector<1x384xf32>
    %54 = tpu.matmul %52, %53, %cst {dimension_numbers = #tpu.dot_dimension_numbers<[1], [0], [0], [1], [0, 0, 1, 1], [], []>} : vector<1x128xbf16>, vector<128x384xbf16>, vector<1x384xf32> -> vector<1x384xf32>
    %c0_i32_39 = arith.constant 0 : i32
    %55 = tpu.memref_slice %arg3[%0, %c0_i32_39] : memref<11000x128xf32, #tpu.memory_space<any>> -> memref<1x128xf32, #tpu.memory_space<any>>
    %c0_i32_40 = arith.constant 0 : i32
    %c0_i32_41 = arith.constant 0 : i32
    %56 = tpu.memref_slice %arg13[%c0_i32_40, %c0_i32_41] : memref<8x128xf32, #tpu.memory_space<vmem>> -> memref<1x128xf32, #tpu.memory_space<vmem>>
    tpu.wait_dma2 semaphore(%arg14 : memref<!tpu.dma_semaphore, #tpu.memory_space<semaphore_mem>>) src(%55 : memref<1x128xf32, #tpu.memory_space<any>>) dst(%56 : memref<1x128xf32, #tpu.memory_space<vmem>>)
    %c0_i32_42 = arith.constant 0 : i32
    %57 = tpu.memref_slice %arg3[%3, %c0_i32_42] : memref<11000x128xf32, #tpu.memory_space<any>> -> memref<1x128xf32, #tpu.memory_space<any>>
    %c1_i32_43 = arith.constant 1 : i32
    %c0_i32_44 = arith.constant 0 : i32
    %58 = tpu.memref_slice %arg13[%c1_i32_43, %c0_i32_44] : memref<8x128xf32, #tpu.memory_space<vmem>> -> memref<1x128xf32, #tpu.memory_space<vmem>>
    tpu.wait_dma2 semaphore(%arg14 : memref<!tpu.dma_semaphore, #tpu.memory_space<semaphore_mem>>) src(%57 : memref<1x128xf32, #tpu.memory_space<any>>) dst(%58 : memref<1x128xf32, #tpu.memory_space<vmem>>)
    %c0_i32_45 = arith.constant 0 : i32
    %59 = tpu.memref_slice %arg3[%6, %c0_i32_45] : memref<11000x128xf32, #tpu.memory_space<any>> -> memref<1x128xf32, #tpu.memory_space<any>>
    %c2_i32_46 = arith.constant 2 : i32
    %c0_i32_47 = arith.constant 0 : i32
    %60 = tpu.memref_slice %arg13[%c2_i32_46, %c0_i32_47] : memref<8x128xf32, #tpu.memory_space<vmem>> -> memref<1x128xf32, #tpu.memory_space<vmem>>
    tpu.wait_dma2 semaphore(%arg14 : memref<!tpu.dma_semaphore, #tpu.memory_space<semaphore_mem>>) src(%59 : memref<1x128xf32, #tpu.memory_space<any>>) dst(%60 : memref<1x128xf32, #tpu.memory_space<vmem>>)
    %c0_i32_48 = arith.constant 0 : i32
    %61 = tpu.memref_slice %arg3[%9, %c0_i32_48] : memref<11000x128xf32, #tpu.memory_space<any>> -> memref<1x128xf32, #tpu.memory_space<any>>
    %c3_i32_49 = arith.constant 3 : i32
    %c0_i32_50 = arith.constant 0 : i32
    %62 = tpu.memref_slice %arg13[%c3_i32_49, %c0_i32_50] : memref<8x128xf32, #tpu.memory_space<vmem>> -> memref<1x128xf32, #tpu.memory_space<vmem>>
    tpu.wait_dma2 semaphore(%arg14 : memref<!tpu.dma_semaphore, #tpu.memory_space<semaphore_mem>>) src(%61 : memref<1x128xf32, #tpu.memory_space<any>>) dst(%62 : memref<1x128xf32, #tpu.memory_space<vmem>>)
    %c0_i32_51 = arith.constant 0 : i32
    %63 = tpu.memref_slice %arg3[%12, %c0_i32_51] : memref<11000x128xf32, #tpu.memory_space<any>> -> memref<1x128xf32, #tpu.memory_space<any>>
    %c4_i32_52 = arith.constant 4 : i32
    %c0_i32_53 = arith.constant 0 : i32
    %64 = tpu.memref_slice %arg13[%c4_i32_52, %c0_i32_53] : memref<8x128xf32, #tpu.memory_space<vmem>> -> memref<1x128xf32, #tpu.memory_space<vmem>>
    tpu.wait_dma2 semaphore(%arg14 : memref<!tpu.dma_semaphore, #tpu.memory_space<semaphore_mem>>) src(%63 : memref<1x128xf32, #tpu.memory_space<any>>) dst(%64 : memref<1x128xf32, #tpu.memory_space<vmem>>)
    %c0_i32_54 = arith.constant 0 : i32
    %65 = tpu.memref_slice %arg3[%15, %c0_i32_54] : memref<11000x128xf32, #tpu.memory_space<any>> -> memref<1x128xf32, #tpu.memory_space<any>>
    %c5_i32_55 = arith.constant 5 : i32
    %c0_i32_56 = arith.constant 0 : i32
    %66 = tpu.memref_slice %arg13[%c5_i32_55, %c0_i32_56] : memref<8x128xf32, #tpu.memory_space<vmem>> -> memref<1x128xf32, #tpu.memory_space<vmem>>
    tpu.wait_dma2 semaphore(%arg14 : memref<!tpu.dma_semaphore, #tpu.memory_space<semaphore_mem>>) src(%65 : memref<1x128xf32, #tpu.memory_space<any>>) dst(%66 : memref<1x128xf32, #tpu.memory_space<vmem>>)
    %c0_i32_57 = arith.constant 0 : i32
    %67 = tpu.memref_slice %arg3[%18, %c0_i32_57] : memref<11000x128xf32, #tpu.memory_space<any>> -> memref<1x128xf32, #tpu.memory_space<any>>
    %c6_i32_58 = arith.constant 6 : i32
    %c0_i32_59 = arith.constant 0 : i32
    %68 = tpu.memref_slice %arg13[%c6_i32_58, %c0_i32_59] : memref<8x128xf32, #tpu.memory_space<vmem>> -> memref<1x128xf32, #tpu.memory_space<vmem>>
    tpu.wait_dma2 semaphore(%arg14 : memref<!tpu.dma_semaphore, #tpu.memory_space<semaphore_mem>>) src(%67 : memref<1x128xf32, #tpu.memory_space<any>>) dst(%68 : memref<1x128xf32, #tpu.memory_space<vmem>>)
    %c0_i32_60 = arith.constant 0 : i32
    %69 = tpu.memref_slice %arg3[%21, %c0_i32_60] : memref<11000x128xf32, #tpu.memory_space<any>> -> memref<1x128xf32, #tpu.memory_space<any>>
    %c7_i32_61 = arith.constant 7 : i32
    %c0_i32_62 = arith.constant 0 : i32
    %70 = tpu.memref_slice %arg13[%c7_i32_61, %c0_i32_62] : memref<8x128xf32, #tpu.memory_space<vmem>> -> memref<1x128xf32, #tpu.memory_space<vmem>>
    tpu.wait_dma2 semaphore(%arg14 : memref<!tpu.dma_semaphore, #tpu.memory_space<semaphore_mem>>) src(%69 : memref<1x128xf32, #tpu.memory_space<any>>) dst(%70 : memref<1x128xf32, #tpu.memory_space<vmem>>)
    %c0_63 = arith.constant 0 : index
    %c0_64 = arith.constant 0 : index
    %71 = vector.load %arg13[%c0_63, %c0_64] : memref<8x128xf32, #tpu.memory_space<vmem>>, vector<8x128xf32>
    %72 = arith.truncf %71 : vector<8x128xf32> to vector<8x128xbf16>
    %c0_65 = arith.constant 0 : index
    %c0_66 = arith.constant 0 : index
    %73 = vector.load %arg5[%c0_65, %c0_66] : memref<128x384xbf16, #tpu.memory_space<vmem>>, vector<128x384xbf16>
    %cst_67 = arith.constant dense<0.000000e+00> : vector<8x384xf32>
    %74 = tpu.matmul %72, %73, %cst_67 {dimension_numbers = #tpu.dot_dimension_numbers<[1], [0], [0], [1], [0, 0, 1, 1], [], []>} : vector<8x128xbf16>, vector<128x384xbf16>, vector<8x384xf32> -> vector<8x384xf32>
    %c0_68 = arith.constant 0 : index
    %c0_69 = arith.constant 0 : index
    %75 = vector.load %arg6[%c0_68, %c0_69] : memref<1x384xf32, #tpu.memory_space<vmem>>, vector<1x384xf32>
    %76 = vector.broadcast %75 : vector<1x384xf32> to vector<8x384xf32>
    %77 = arith.addf %74, %76 : vector<8x384xf32>
    %78 = arith.addf %77, %49 : vector<8x384xf32>
    %79 = vector.extract_strided_slice %78 {offsets = [0, 0], sizes = [1, 384], strides = [1, 1]} : vector<8x384xf32> to vector<1x384xf32>
    %80 = vector.extract_strided_slice %79 {offsets = [0, 0], sizes = [1, 128], strides = [1, 1]} : vector<1x384xf32> to vector<1x128xf32>
    %81 = vector.extract_strided_slice %54 {offsets = [0, 0], sizes = [1, 128], strides = [1, 1]} : vector<1x384xf32> to vector<1x128xf32>
    %82 = arith.addf %80, %81 : vector<1x128xf32>
    %83 = arith.negf %82 : vector<1x128xf32>
    %84 = math.exp %83 : vector<1x128xf32>
    %cst_70 = arith.constant 1.000000e+00 : f32
    %85 = vector.broadcast %cst_70 : f32 to vector<1x128xf32>
    %86 = arith.addf %85, %84 : vector<1x128xf32>
    %87 = arith.divf %85, %86 : vector<1x128xf32>
    %88 = vector.extract_strided_slice %79 {offsets = [0, 128], sizes = [1, 128], strides = [1, 1]} : vector<1x384xf32> to vector<1x128xf32>
    %89 = vector.extract_strided_slice %54 {offsets = [0, 128], sizes = [1, 128], strides = [1, 1]} : vector<1x384xf32> to vector<1x128xf32>
    %90 = arith.addf %88, %89 : vector<1x128xf32>
    %91 = arith.negf %90 : vector<1x128xf32>
    %92 = math.exp %91 : vector<1x128xf32>
    %cst_71 = arith.constant 1.000000e+00 : f32
    %93 = vector.broadcast %cst_71 : f32 to vector<1x128xf32>
    %94 = arith.addf %93, %92 : vector<1x128xf32>
    %95 = arith.divf %93, %94 : vector<1x128xf32>
    %96 = vector.extract_strided_slice %79 {offsets = [0, 256], sizes = [1, 128], strides = [1, 1]} : vector<1x384xf32> to vector<1x128xf32>
    %97 = vector.extract_strided_slice %54 {offsets = [0, 256], sizes = [1, 128], strides = [1, 1]} : vector<1x384xf32> to vector<1x128xf32>
    %98 = arith.addf %97, %50 : vector<1x128xf32>
    %99 = arith.mulf %87, %98 : vector<1x128xf32>
    %100 = arith.addf %96, %99 : vector<1x128xf32>
    %101 = math.tanh %100 : vector<1x128xf32>
    %cst_72 = arith.constant 1.000000e+00 : f32
    %102 = vector.broadcast %cst_72 : f32 to vector<1x128xf32>
    %103 = arith.subf %102, %95 : vector<1x128xf32>
    %104 = arith.mulf %103, %101 : vector<1x128xf32>
    %105 = arith.mulf %95, %51 : vector<1x128xf32>
    %106 = arith.addf %104, %105 : vector<1x128xf32>
    %c0_i32_73 = arith.constant 0 : i32
    %107 = arith.cmpi sgt, %24, %c0_i32_73 : i32
    %108 = arith.select %107, %106, %51 : vector<1x128xf32>
    %109 = arith.truncf %108 : vector<1x128xf32> to vector<1x128xbf16>
    %c0_74 = arith.constant 0 : index
    %c0_75 = arith.constant 0 : index
    %110 = vector.load %arg7[%c0_74, %c0_75] : memref<128x384xbf16, #tpu.memory_space<vmem>>, vector<128x384xbf16>
    %cst_76 = arith.constant dense<0.000000e+00> : vector<1x384xf32>
    %111 = tpu.matmul %109, %110, %cst_76 {dimension_numbers = #tpu.dot_dimension_numbers<[1], [0], [0], [1], [0, 0, 1, 1], [], []>} : vector<1x128xbf16>, vector<128x384xbf16>, vector<1x384xf32> -> vector<1x384xf32>
    %112 = vector.extract_strided_slice %78 {offsets = [1, 0], sizes = [1, 384], strides = [1, 1]} : vector<8x384xf32> to vector<1x384xf32>
    %113 = vector.extract_strided_slice %112 {offsets = [0, 0], sizes = [1, 128], strides = [1, 1]} : vector<1x384xf32> to vector<1x128xf32>
    %114 = vector.extract_strided_slice %111 {offsets = [0, 0], sizes = [1, 128], strides = [1, 1]} : vector<1x384xf32> to vector<1x128xf32>
    %115 = arith.addf %113, %114 : vector<1x128xf32>
    %116 = arith.negf %115 : vector<1x128xf32>
    %117 = math.exp %116 : vector<1x128xf32>
    %cst_77 = arith.constant 1.000000e+00 : f32
    %118 = vector.broadcast %cst_77 : f32 to vector<1x128xf32>
    %119 = arith.addf %118, %117 : vector<1x128xf32>
    %120 = arith.divf %118, %119 : vector<1x128xf32>
    %121 = vector.extract_strided_slice %112 {offsets = [0, 128], sizes = [1, 128], strides = [1, 1]} : vector<1x384xf32> to vector<1x128xf32>
    %122 = vector.extract_strided_slice %111 {offsets = [0, 128], sizes = [1, 128], strides = [1, 1]} : vector<1x384xf32> to vector<1x128xf32>
    %123 = arith.addf %121, %122 : vector<1x128xf32>
    %124 = arith.negf %123 : vector<1x128xf32>
    %125 = math.exp %124 : vector<1x128xf32>
    %cst_78 = arith.constant 1.000000e+00 : f32
    %126 = vector.broadcast %cst_78 : f32 to vector<1x128xf32>
    %127 = arith.addf %126, %125 : vector<1x128xf32>
    %128 = arith.divf %126, %127 : vector<1x128xf32>
    %129 = vector.extract_strided_slice %112 {offsets = [0, 256], sizes = [1, 128], strides = [1, 1]} : vector<1x384xf32> to vector<1x128xf32>
    %130 = vector.extract_strided_slice %111 {offsets = [0, 256], sizes = [1, 128], strides = [1, 1]} : vector<1x384xf32> to vector<1x128xf32>
    %131 = arith.addf %130, %50 : vector<1x128xf32>
    %132 = arith.mulf %120, %131 : vector<1x128xf32>
    %133 = arith.addf %129, %132 : vector<1x128xf32>
    %134 = math.tanh %133 : vector<1x128xf32>
    %cst_79 = arith.constant 1.000000e+00 : f32
    %135 = vector.broadcast %cst_79 : f32 to vector<1x128xf32>
    %136 = arith.subf %135, %128 : vector<1x128xf32>
    %137 = arith.mulf %136, %134 : vector<1x128xf32>
    %138 = arith.mulf %128, %108 : vector<1x128xf32>
    %139 = arith.addf %137, %138 : vector<1x128xf32>
    %c1_i32_80 = arith.constant 1 : i32
    %140 = arith.cmpi sgt, %24, %c1_i32_80 : i32
    %141 = arith.select %140, %139, %108 : vector<1x128xf32>
    %142 = arith.truncf %141 : vector<1x128xf32> to vector<1x128xbf16>
    %c0_81 = arith.constant 0 : index
    %c0_82 = arith.constant 0 : index
    %143 = vector.load %arg7[%c0_81, %c0_82] : memref<128x384xbf16, #tpu.memory_space<vmem>>, vector<128x384xbf16>
    %cst_83 = arith.constant dense<0.000000e+00> : vector<1x384xf32>
    %144 = tpu.matmul %142, %143, %cst_83 {dimension_numbers = #tpu.dot_dimension_numbers<[1], [0], [0], [1], [0, 0, 1, 1], [], []>} : vector<1x128xbf16>, vector<128x384xbf16>, vector<1x384xf32> -> vector<1x384xf32>
    %145 = vector.extract_strided_slice %78 {offsets = [2, 0], sizes = [1, 384], strides = [1, 1]} : vector<8x384xf32> to vector<1x384xf32>
    %146 = vector.extract_strided_slice %145 {offsets = [0, 0], sizes = [1, 128], strides = [1, 1]} : vector<1x384xf32> to vector<1x128xf32>
    %147 = vector.extract_strided_slice %144 {offsets = [0, 0], sizes = [1, 128], strides = [1, 1]} : vector<1x384xf32> to vector<1x128xf32>
    %148 = arith.addf %146, %147 : vector<1x128xf32>
    %149 = arith.negf %148 : vector<1x128xf32>
    %150 = math.exp %149 : vector<1x128xf32>
    %cst_84 = arith.constant 1.000000e+00 : f32
    %151 = vector.broadcast %cst_84 : f32 to vector<1x128xf32>
    %152 = arith.addf %151, %150 : vector<1x128xf32>
    %153 = arith.divf %151, %152 : vector<1x128xf32>
    %154 = vector.extract_strided_slice %145 {offsets = [0, 128], sizes = [1, 128], strides = [1, 1]} : vector<1x384xf32> to vector<1x128xf32>
    %155 = vector.extract_strided_slice %144 {offsets = [0, 128], sizes = [1, 128], strides = [1, 1]} : vector<1x384xf32> to vector<1x128xf32>
    %156 = arith.addf %154, %155 : vector<1x128xf32>
    %157 = arith.negf %156 : vector<1x128xf32>
    %158 = math.exp %157 : vector<1x128xf32>
    %cst_85 = arith.constant 1.000000e+00 : f32
    %159 = vector.broadcast %cst_85 : f32 to vector<1x128xf32>
    %160 = arith.addf %159, %158 : vector<1x128xf32>
    %161 = arith.divf %159, %160 : vector<1x128xf32>
    %162 = vector.extract_strided_slice %145 {offsets = [0, 256], sizes = [1, 128], strides = [1, 1]} : vector<1x384xf32> to vector<1x128xf32>
    %163 = vector.extract_strided_slice %144 {offsets = [0, 256], sizes = [1, 128], strides = [1, 1]} : vector<1x384xf32> to vector<1x128xf32>
    %164 = arith.addf %163, %50 : vector<1x128xf32>
    %165 = arith.mulf %153, %164 : vector<1x128xf32>
    %166 = arith.addf %162, %165 : vector<1x128xf32>
    %167 = math.tanh %166 : vector<1x128xf32>
    %cst_86 = arith.constant 1.000000e+00 : f32
    %168 = vector.broadcast %cst_86 : f32 to vector<1x128xf32>
    %169 = arith.subf %168, %161 : vector<1x128xf32>
    %170 = arith.mulf %169, %167 : vector<1x128xf32>
    %171 = arith.mulf %161, %141 : vector<1x128xf32>
    %172 = arith.addf %170, %171 : vector<1x128xf32>
    %c2_i32_87 = arith.constant 2 : i32
    %173 = arith.cmpi sgt, %24, %c2_i32_87 : i32
    %174 = arith.select %173, %172, %141 : vector<1x128xf32>
    %175 = arith.truncf %174 : vector<1x128xf32> to vector<1x128xbf16>
    %c0_88 = arith.constant 0 : index
    %c0_89 = arith.constant 0 : index
    %176 = vector.load %arg7[%c0_88, %c0_89] : memref<128x384xbf16, #tpu.memory_space<vmem>>, vector<128x384xbf16>
    %cst_90 = arith.constant dense<0.000000e+00> : vector<1x384xf32>
    %177 = tpu.matmul %175, %176, %cst_90 {dimension_numbers = #tpu.dot_dimension_numbers<[1], [0], [0], [1], [0, 0, 1, 1], [], []>} : vector<1x128xbf16>, vector<128x384xbf16>, vector<1x384xf32> -> vector<1x384xf32>
    %178 = vector.extract_strided_slice %78 {offsets = [3, 0], sizes = [1, 384], strides = [1, 1]} : vector<8x384xf32> to vector<1x384xf32>
    %179 = vector.extract_strided_slice %178 {offsets = [0, 0], sizes = [1, 128], strides = [1, 1]} : vector<1x384xf32> to vector<1x128xf32>
    %180 = vector.extract_strided_slice %177 {offsets = [0, 0], sizes = [1, 128], strides = [1, 1]} : vector<1x384xf32> to vector<1x128xf32>
    %181 = arith.addf %179, %180 : vector<1x128xf32>
    %182 = arith.negf %181 : vector<1x128xf32>
    %183 = math.exp %182 : vector<1x128xf32>
    %cst_91 = arith.constant 1.000000e+00 : f32
    %184 = vector.broadcast %cst_91 : f32 to vector<1x128xf32>
    %185 = arith.addf %184, %183 : vector<1x128xf32>
    %186 = arith.divf %184, %185 : vector<1x128xf32>
    %187 = vector.extract_strided_slice %178 {offsets = [0, 128], sizes = [1, 128], strides = [1, 1]} : vector<1x384xf32> to vector<1x128xf32>
    %188 = vector.extract_strided_slice %177 {offsets = [0, 128], sizes = [1, 128], strides = [1, 1]} : vector<1x384xf32> to vector<1x128xf32>
    %189 = arith.addf %187, %188 : vector<1x128xf32>
    %190 = arith.negf %189 : vector<1x128xf32>
    %191 = math.exp %190 : vector<1x128xf32>
    %cst_92 = arith.constant 1.000000e+00 : f32
    %192 = vector.broadcast %cst_92 : f32 to vector<1x128xf32>
    %193 = arith.addf %192, %191 : vector<1x128xf32>
    %194 = arith.divf %192, %193 : vector<1x128xf32>
    %195 = vector.extract_strided_slice %178 {offsets = [0, 256], sizes = [1, 128], strides = [1, 1]} : vector<1x384xf32> to vector<1x128xf32>
    %196 = vector.extract_strided_slice %177 {offsets = [0, 256], sizes = [1, 128], strides = [1, 1]} : vector<1x384xf32> to vector<1x128xf32>
    %197 = arith.addf %196, %50 : vector<1x128xf32>
    %198 = arith.mulf %186, %197 : vector<1x128xf32>
    %199 = arith.addf %195, %198 : vector<1x128xf32>
    %200 = math.tanh %199 : vector<1x128xf32>
    %cst_93 = arith.constant 1.000000e+00 : f32
    %201 = vector.broadcast %cst_93 : f32 to vector<1x128xf32>
    %202 = arith.subf %201, %194 : vector<1x128xf32>
    %203 = arith.mulf %202, %200 : vector<1x128xf32>
    %204 = arith.mulf %194, %174 : vector<1x128xf32>
    %205 = arith.addf %203, %204 : vector<1x128xf32>
    %c3_i32_94 = arith.constant 3 : i32
    %206 = arith.cmpi sgt, %24, %c3_i32_94 : i32
    %207 = arith.select %206, %205, %174 : vector<1x128xf32>
    %208 = arith.truncf %207 : vector<1x128xf32> to vector<1x128xbf16>
    %c0_95 = arith.constant 0 : index
    %c0_96 = arith.constant 0 : index
    %209 = vector.load %arg7[%c0_95, %c0_96] : memref<128x384xbf16, #tpu.memory_space<vmem>>, vector<128x384xbf16>
    %cst_97 = arith.constant dense<0.000000e+00> : vector<1x384xf32>
    %210 = tpu.matmul %208, %209, %cst_97 {dimension_numbers = #tpu.dot_dimension_numbers<[1], [0], [0], [1], [0, 0, 1, 1], [], []>} : vector<1x128xbf16>, vector<128x384xbf16>, vector<1x384xf32> -> vector<1x384xf32>
    %211 = vector.extract_strided_slice %78 {offsets = [4, 0], sizes = [1, 384], strides = [1, 1]} : vector<8x384xf32> to vector<1x384xf32>
    %212 = vector.extract_strided_slice %211 {offsets = [0, 0], sizes = [1, 128], strides = [1, 1]} : vector<1x384xf32> to vector<1x128xf32>
    %213 = vector.extract_strided_slice %210 {offsets = [0, 0], sizes = [1, 128], strides = [1, 1]} : vector<1x384xf32> to vector<1x128xf32>
    %214 = arith.addf %212, %213 : vector<1x128xf32>
    %215 = arith.negf %214 : vector<1x128xf32>
    %216 = math.exp %215 : vector<1x128xf32>
    %cst_98 = arith.constant 1.000000e+00 : f32
    %217 = vector.broadcast %cst_98 : f32 to vector<1x128xf32>
    %218 = arith.addf %217, %216 : vector<1x128xf32>
    %219 = arith.divf %217, %218 : vector<1x128xf32>
    %220 = vector.extract_strided_slice %211 {offsets = [0, 128], sizes = [1, 128], strides = [1, 1]} : vector<1x384xf32> to vector<1x128xf32>
    %221 = vector.extract_strided_slice %210 {offsets = [0, 128], sizes = [1, 128], strides = [1, 1]} : vector<1x384xf32> to vector<1x128xf32>
    %222 = arith.addf %220, %221 : vector<1x128xf32>
    %223 = arith.negf %222 : vector<1x128xf32>
    %224 = math.exp %223 : vector<1x128xf32>
    %cst_99 = arith.constant 1.000000e+00 : f32
    %225 = vector.broadcast %cst_99 : f32 to vector<1x128xf32>
    %226 = arith.addf %225, %224 : vector<1x128xf32>
    %227 = arith.divf %225, %226 : vector<1x128xf32>
    %228 = vector.extract_strided_slice %211 {offsets = [0, 256], sizes = [1, 128], strides = [1, 1]} : vector<1x384xf32> to vector<1x128xf32>
    %229 = vector.extract_strided_slice %210 {offsets = [0, 256], sizes = [1, 128], strides = [1, 1]} : vector<1x384xf32> to vector<1x128xf32>
    %230 = arith.addf %229, %50 : vector<1x128xf32>
    %231 = arith.mulf %219, %230 : vector<1x128xf32>
    %232 = arith.addf %228, %231 : vector<1x128xf32>
    %233 = math.tanh %232 : vector<1x128xf32>
    %cst_100 = arith.constant 1.000000e+00 : f32
    %234 = vector.broadcast %cst_100 : f32 to vector<1x128xf32>
    %235 = arith.subf %234, %227 : vector<1x128xf32>
    %236 = arith.mulf %235, %233 : vector<1x128xf32>
    %237 = arith.mulf %227, %207 : vector<1x128xf32>
    %238 = arith.addf %236, %237 : vector<1x128xf32>
    %c4_i32_101 = arith.constant 4 : i32
    %239 = arith.cmpi sgt, %24, %c4_i32_101 : i32
    %240 = arith.select %239, %238, %207 : vector<1x128xf32>
    %241 = arith.truncf %240 : vector<1x128xf32> to vector<1x128xbf16>
    %c0_102 = arith.constant 0 : index
    %c0_103 = arith.constant 0 : index
    %242 = vector.load %arg7[%c0_102, %c0_103] : memref<128x384xbf16, #tpu.memory_space<vmem>>, vector<128x384xbf16>
    %cst_104 = arith.constant dense<0.000000e+00> : vector<1x384xf32>
    %243 = tpu.matmul %241, %242, %cst_104 {dimension_numbers = #tpu.dot_dimension_numbers<[1], [0], [0], [1], [0, 0, 1, 1], [], []>} : vector<1x128xbf16>, vector<128x384xbf16>, vector<1x384xf32> -> vector<1x384xf32>
    %244 = vector.extract_strided_slice %78 {offsets = [5, 0], sizes = [1, 384], strides = [1, 1]} : vector<8x384xf32> to vector<1x384xf32>
    %245 = vector.extract_strided_slice %244 {offsets = [0, 0], sizes = [1, 128], strides = [1, 1]} : vector<1x384xf32> to vector<1x128xf32>
    %246 = vector.extract_strided_slice %243 {offsets = [0, 0], sizes = [1, 128], strides = [1, 1]} : vector<1x384xf32> to vector<1x128xf32>
    %247 = arith.addf %245, %246 : vector<1x128xf32>
    %248 = arith.negf %247 : vector<1x128xf32>
    %249 = math.exp %248 : vector<1x128xf32>
    %cst_105 = arith.constant 1.000000e+00 : f32
    %250 = vector.broadcast %cst_105 : f32 to vector<1x128xf32>
    %251 = arith.addf %250, %249 : vector<1x128xf32>
    %252 = arith.divf %250, %251 : vector<1x128xf32>
    %253 = vector.extract_strided_slice %244 {offsets = [0, 128], sizes = [1, 128], strides = [1, 1]} : vector<1x384xf32> to vector<1x128xf32>
    %254 = vector.extract_strided_slice %243 {offsets = [0, 128], sizes = [1, 128], strides = [1, 1]} : vector<1x384xf32> to vector<1x128xf32>
    %255 = arith.addf %253, %254 : vector<1x128xf32>
    %256 = arith.negf %255 : vector<1x128xf32>
    %257 = math.exp %256 : vector<1x128xf32>
    %cst_106 = arith.constant 1.000000e+00 : f32
    %258 = vector.broadcast %cst_106 : f32 to vector<1x128xf32>
    %259 = arith.addf %258, %257 : vector<1x128xf32>
    %260 = arith.divf %258, %259 : vector<1x128xf32>
    %261 = vector.extract_strided_slice %244 {offsets = [0, 256], sizes = [1, 128], strides = [1, 1]} : vector<1x384xf32> to vector<1x128xf32>
    %262 = vector.extract_strided_slice %243 {offsets = [0, 256], sizes = [1, 128], strides = [1, 1]} : vector<1x384xf32> to vector<1x128xf32>
    %263 = arith.addf %262, %50 : vector<1x128xf32>
    %264 = arith.mulf %252, %263 : vector<1x128xf32>
    %265 = arith.addf %261, %264 : vector<1x128xf32>
    %266 = math.tanh %265 : vector<1x128xf32>
    %cst_107 = arith.constant 1.000000e+00 : f32
    %267 = vector.broadcast %cst_107 : f32 to vector<1x128xf32>
    %268 = arith.subf %267, %260 : vector<1x128xf32>
    %269 = arith.mulf %268, %266 : vector<1x128xf32>
    %270 = arith.mulf %260, %240 : vector<1x128xf32>
    %271 = arith.addf %269, %270 : vector<1x128xf32>
    %c5_i32_108 = arith.constant 5 : i32
    %272 = arith.cmpi sgt, %24, %c5_i32_108 : i32
    %273 = arith.select %272, %271, %240 : vector<1x128xf32>
    %274 = arith.truncf %273 : vector<1x128xf32> to vector<1x128xbf16>
    %c0_109 = arith.constant 0 : index
    %c0_110 = arith.constant 0 : index
    %275 = vector.load %arg7[%c0_109, %c0_110] : memref<128x384xbf16, #tpu.memory_space<vmem>>, vector<128x384xbf16>
    %cst_111 = arith.constant dense<0.000000e+00> : vector<1x384xf32>
    %276 = tpu.matmul %274, %275, %cst_111 {dimension_numbers = #tpu.dot_dimension_numbers<[1], [0], [0], [1], [0, 0, 1, 1], [], []>} : vector<1x128xbf16>, vector<128x384xbf16>, vector<1x384xf32> -> vector<1x384xf32>
    %277 = vector.extract_strided_slice %78 {offsets = [6, 0], sizes = [1, 384], strides = [1, 1]} : vector<8x384xf32> to vector<1x384xf32>
    %278 = vector.extract_strided_slice %277 {offsets = [0, 0], sizes = [1, 128], strides = [1, 1]} : vector<1x384xf32> to vector<1x128xf32>
    %279 = vector.extract_strided_slice %276 {offsets = [0, 0], sizes = [1, 128], strides = [1, 1]} : vector<1x384xf32> to vector<1x128xf32>
    %280 = arith.addf %278, %279 : vector<1x128xf32>
    %281 = arith.negf %280 : vector<1x128xf32>
    %282 = math.exp %281 : vector<1x128xf32>
    %cst_112 = arith.constant 1.000000e+00 : f32
    %283 = vector.broadcast %cst_112 : f32 to vector<1x128xf32>
    %284 = arith.addf %283, %282 : vector<1x128xf32>
    %285 = arith.divf %283, %284 : vector<1x128xf32>
    %286 = vector.extract_strided_slice %277 {offsets = [0, 128], sizes = [1, 128], strides = [1, 1]} : vector<1x384xf32> to vector<1x128xf32>
    %287 = vector.extract_strided_slice %276 {offsets = [0, 128], sizes = [1, 128], strides = [1, 1]} : vector<1x384xf32> to vector<1x128xf32>
    %288 = arith.addf %286, %287 : vector<1x128xf32>
    %289 = arith.negf %288 : vector<1x128xf32>
    %290 = math.exp %289 : vector<1x128xf32>
    %cst_113 = arith.constant 1.000000e+00 : f32
    %291 = vector.broadcast %cst_113 : f32 to vector<1x128xf32>
    %292 = arith.addf %291, %290 : vector<1x128xf32>
    %293 = arith.divf %291, %292 : vector<1x128xf32>
    %294 = vector.extract_strided_slice %277 {offsets = [0, 256], sizes = [1, 128], strides = [1, 1]} : vector<1x384xf32> to vector<1x128xf32>
    %295 = vector.extract_strided_slice %276 {offsets = [0, 256], sizes = [1, 128], strides = [1, 1]} : vector<1x384xf32> to vector<1x128xf32>
    %296 = arith.addf %295, %50 : vector<1x128xf32>
    %297 = arith.mulf %285, %296 : vector<1x128xf32>
    %298 = arith.addf %294, %297 : vector<1x128xf32>
    %299 = math.tanh %298 : vector<1x128xf32>
    %cst_114 = arith.constant 1.000000e+00 : f32
    %300 = vector.broadcast %cst_114 : f32 to vector<1x128xf32>
    %301 = arith.subf %300, %293 : vector<1x128xf32>
    %302 = arith.mulf %301, %299 : vector<1x128xf32>
    %303 = arith.mulf %293, %273 : vector<1x128xf32>
    %304 = arith.addf %302, %303 : vector<1x128xf32>
    %c6_i32_115 = arith.constant 6 : i32
    %305 = arith.cmpi sgt, %24, %c6_i32_115 : i32
    %306 = arith.select %305, %304, %273 : vector<1x128xf32>
    %307 = arith.truncf %306 : vector<1x128xf32> to vector<1x128xbf16>
    %c0_116 = arith.constant 0 : index
    %c0_117 = arith.constant 0 : index
    %308 = vector.load %arg7[%c0_116, %c0_117] : memref<128x384xbf16, #tpu.memory_space<vmem>>, vector<128x384xbf16>
    %cst_118 = arith.constant dense<0.000000e+00> : vector<1x384xf32>
    %309 = tpu.matmul %307, %308, %cst_118 {dimension_numbers = #tpu.dot_dimension_numbers<[1], [0], [0], [1], [0, 0, 1, 1], [], []>} : vector<1x128xbf16>, vector<128x384xbf16>, vector<1x384xf32> -> vector<1x384xf32>
    %310 = vector.extract_strided_slice %78 {offsets = [7, 0], sizes = [1, 384], strides = [1, 1]} : vector<8x384xf32> to vector<1x384xf32>
    %311 = vector.extract_strided_slice %310 {offsets = [0, 0], sizes = [1, 128], strides = [1, 1]} : vector<1x384xf32> to vector<1x128xf32>
    %312 = vector.extract_strided_slice %309 {offsets = [0, 0], sizes = [1, 128], strides = [1, 1]} : vector<1x384xf32> to vector<1x128xf32>
    %313 = arith.addf %311, %312 : vector<1x128xf32>
    %314 = arith.negf %313 : vector<1x128xf32>
    %315 = math.exp %314 : vector<1x128xf32>
    %cst_119 = arith.constant 1.000000e+00 : f32
    %316 = vector.broadcast %cst_119 : f32 to vector<1x128xf32>
    %317 = arith.addf %316, %315 : vector<1x128xf32>
    %318 = arith.divf %316, %317 : vector<1x128xf32>
    %319 = vector.extract_strided_slice %310 {offsets = [0, 128], sizes = [1, 128], strides = [1, 1]} : vector<1x384xf32> to vector<1x128xf32>
    %320 = vector.extract_strided_slice %309 {offsets = [0, 128], sizes = [1, 128], strides = [1, 1]} : vector<1x384xf32> to vector<1x128xf32>
    %321 = arith.addf %319, %320 : vector<1x128xf32>
    %322 = arith.negf %321 : vector<1x128xf32>
    %323 = math.exp %322 : vector<1x128xf32>
    %cst_120 = arith.constant 1.000000e+00 : f32
    %324 = vector.broadcast %cst_120 : f32 to vector<1x128xf32>
    %325 = arith.addf %324, %323 : vector<1x128xf32>
    %326 = arith.divf %324, %325 : vector<1x128xf32>
    %327 = vector.extract_strided_slice %310 {offsets = [0, 256], sizes = [1, 128], strides = [1, 1]} : vector<1x384xf32> to vector<1x128xf32>
    %328 = vector.extract_strided_slice %309 {offsets = [0, 256], sizes = [1, 128], strides = [1, 1]} : vector<1x384xf32> to vector<1x128xf32>
    %329 = arith.addf %328, %50 : vector<1x128xf32>
    %330 = arith.mulf %318, %329 : vector<1x128xf32>
    %331 = arith.addf %327, %330 : vector<1x128xf32>
    %332 = math.tanh %331 : vector<1x128xf32>
    %cst_121 = arith.constant 1.000000e+00 : f32
    %333 = vector.broadcast %cst_121 : f32 to vector<1x128xf32>
    %334 = arith.subf %333, %326 : vector<1x128xf32>
    %335 = arith.mulf %334, %332 : vector<1x128xf32>
    %336 = arith.mulf %326, %306 : vector<1x128xf32>
    %337 = arith.addf %335, %336 : vector<1x128xf32>
    %c7_i32_122 = arith.constant 7 : i32
    %338 = arith.cmpi sgt, %24, %c7_i32_122 : i32
    %339 = arith.select %338, %337, %306 : vector<1x128xf32>
    %340 = arith.truncf %339 : vector<1x128xf32> to vector<1x128xbf16>
    %c0_123 = arith.constant 0 : index
    %c0_124 = arith.constant 0 : index
    %341 = vector.load %arg10[%c0_123, %c0_124] : memref<128x128xbf16, #tpu.memory_space<vmem>>, vector<128x128xbf16>
    %cst_125 = arith.constant dense<0.000000e+00> : vector<1x128xf32>
    %342 = tpu.matmul %340, %341, %cst_125 {dimension_numbers = #tpu.dot_dimension_numbers<[1], [0], [0], [1], [0, 0, 1, 1], [], []>} : vector<1x128xbf16>, vector<128x128xbf16>, vector<1x128xf32> -> vector<1x128xf32>
    %c0_126 = arith.constant 0 : index
    %c0_127 = arith.constant 0 : index
    %343 = vector.load %arg11[%c0_126, %c0_127] : memref<1x128xf32, #tpu.memory_space<vmem>>, vector<1x128xf32>
    %344 = arith.addf %342, %343 : vector<1x128xf32>
    %345 = tpu.iota {dimensions = array<i32: 1>} : vector<1x128xi32>
    %c3_i32_128 = arith.constant 3 : i32
    %346 = vector.broadcast %c3_i32_128 : i32 to vector<1x128xi32>
    %347 = arith.cmpi slt, %345, %346 : vector<1x128xi32>
    %cst_129 = arith.constant -1.000000e+30 : f32
    %348 = vector.broadcast %cst_129 : f32 to vector<1x128xf32>
    %349 = arith.select %347, %344, %348 : vector<1x128xi1>, vector<1x128xf32>
    %cst_130 = arith.constant dense<0xFF800000> : vector<1xf32>
    %350 = vector.multi_reduction <maximumf>, %349, %cst_130 [1] : vector<1x128xf32> to vector<1xf32>
    %351 = vector.shape_cast %350 : vector<1xf32> to vector<1x1xf32>
    %352 = vector.broadcast %351 : vector<1x1xf32> to vector<1x128xf32>
    %353 = arith.subf %349, %352 : vector<1x128xf32>
    %354 = math.exp %353 : vector<1x128xf32>
    %cst_131 = arith.constant dense<0.000000e+00> : vector<1xf32>
    %355 = vector.multi_reduction <add>, %354, %cst_131 [1] : vector<1x128xf32> to vector<1xf32>
    %356 = vector.shape_cast %355 : vector<1xf32> to vector<1x1xf32>
    %357 = math.log %356 : vector<1x1xf32>
    %358 = vector.broadcast %351 : vector<1x1xf32> to vector<1x128xf32>
    %359 = arith.subf %349, %358 : vector<1x128xf32>
    %360 = vector.broadcast %357 : vector<1x1xf32> to vector<1x128xf32>
    %361 = arith.subf %359, %360 : vector<1x128xf32>
    %cst_132 = arith.constant 0.000000e+00 : f32
    %362 = vector.broadcast %cst_132 : f32 to vector<5x128xf32>
    %363 = tpu.concatenate %339, %344, %361, %362 in 0 : vector<1x128xf32>, vector<1x128xf32>, vector<1x128xf32>, vector<5x128xf32> -> vector<8x128xf32>
    %c0_133 = arith.constant 0 : index
    %c0_134 = arith.constant 0 : index
    %364 = vector.load %arg12[%c0_133, %c0_134] : memref<8x128xf32, #tpu.memory_space<vmem>>, vector<8x128xf32>
    tpu.vector_store %arg12[%c0_133, %c0_134], %363 {strides = array<i32>} : memref<8x128xf32, #tpu.memory_space<vmem>>, vector<8x128xf32>,
    return
  }
}

</mosaic_0001>

<bundles_post_ra>
// kernel: dialog_forward.1
= control target key start
LH: loop header
LB: loop body
LE: loop exit
PB: predicated region body
PF: predicated region fallthrough
CT: control target
= control target key end

     0   :  { %18 = vsyncpa [#allocation7], 0  ;;  %s4183_s0 = inlined_call_operand.<no memory space> [shape: s32[1], index: 0, kind: input, shape index: {}]   ;;  %s4184_s1 = inlined_call_operand.vmem [shape: s32[8], index: 1, kind: input, shape index: {}]   ;;  %s4185_s2 = inlined_call_operand.vmem [shape: s32[8], index: 2, kind: input, shape index: {}]   ;;  %s4186_s3 = inlined_call_operand.hbm [shape: f32[11000,128], index: 3, kind: input, shape index: {}]   ;;  %s4187_s4 = inlined_call_operand.hbm [shape: f32[8,384], index: 4, kind: input, shape index: {}]   ;;  %s4188_s5 = inlined_call_operand.hbm [shape: bf16[128,384], index: 5, kind: input, shape index: {}]   ;;  %s4189_s6 = inlined_call_operand.hbm [shape: f32[1,384], index: 6, kind: input, shape index: {}]   ;;  %s4190_s7 = inlined_call_operand.hbm [shape: bf16[128,384], index: 7, kind: input, shape index: {}]   ;;  %s4191_s8 = inlined_call_operand.hbm [shape: f32[1,128], index: 8, kind: input, shape index: {}]   ;;  %s4192_s9 = inlined_call_operand.hbm [shape: f32[1,128], index: 9, kind: input, shape index: {}]   ;;  %s4193_s10 = inlined_call_operand.hbm [shape: bf16[128,128], index: 10, kind: input, shape index: {}]   ;;  %s4194_s11 = inlined_call_operand.hbm [shape: f32[1,128], index: 11, kind: input, shape index: {}]   ;;  %s4195_s12 = inlined_call_operand.vmem [shape: f32[8,128], index: 12, kind: output, shape index: {}]  }
   0x1   :  { %19 = vsyncpa [#allocation9], 0 }
   0x2   :  { %20 = vsyncpa [#allocation6], 0 }
   0x3   :  { %21 = vsyncpa [#allocation12], 0 }
   0x4   :  { %22 = vsyncpa [#allocation15], 0 }
   0x5   :  { %23 = vsyncpa [#allocation18], 0 }
   0x6   :  { %24 = vsyncpa [#allocation21], 0  ;;  %s3337_s21 = smov [#allocation11]   ;;  %s2929_s25 = scalar_lea.hbm %s4188_s5, 3072 }
   0x7   :  { %s62_s22 = sshll.u32 %s3337_s21, 4  ;;  %p2930_p0 = scmp.ne.s32.totalorder %s4188_s5, %s2929_s25  ;;  %s63_s22 = int_to_ptr.vmem [resolvable:$true] %s62_s22 }
   0x8   :  { %p2933_p1 = scmp.lt.u32.totalorder %s2929_s25, %s4188_s5 }
   0xa   :  { %p2935_p2 = pnand %p2933_p1, %p2930_p0 }
   0xc   :  { %2938 = shalt.err (!%p2935_p2)
}
   0xd   :  { %s2939_s30 = scalar_lea.vmem %s63_s22, 3072  ;;  %p2944_p4 = scmp.lt.s32.totalorder %s63_s22, %s63_s22 }
   0xe   :  { %p2940_p3 = scmp.ne.s32.totalorder %s63_s22, %s2939_s30  ;;  %p2945_p5 = scmp.lt.s32.totalorder %s2939_s30, %s2939_s30 }
  0x10   :  { %p2946_p6 = por %p2945_p5, %p2944_p4 }
  0x12   :  { %p2947_p7 = pnand %p2946_p6, %p2940_p3 }
  0x14   :  { %2950 = shalt.err (!%p2947_p7)
}
  0x15   :  { %s3338_s13 = smov 192   ;;  %s3339_s14 = smov 12  }
  0x16   :  { %68 = dma.hbm_to_vmem [thread:$0]  %s4188_s5, 3072, %s63_s22, [#allocation12], %s3338_s13, %s3338_s13, %s3339_s14  }
  0x17   :  { %s3340_s17 = smov [#allocation14]   ;;  %s3341_s19 = smov [#allocation17]  }
  0x18   :  { %s84_s18 = sshll.u32 %s3340_s17, 4  ;;  %s107_s20 = sshll.u32 %s3341_s19, 4  ;;  %s85_s18 = int_to_ptr.vmem [resolvable:$true] %s84_s18  ;;  %s108_s20 = int_to_ptr.vmem [resolvable:$true] %s107_s20 }
  0x19   :  { %s2951_s24 = scalar_lea.hbm %s4190_s7, 3072 }
  0x1a   :  { %p2952_p8 = scmp.ne.s32.totalorder %s4190_s7, %s2951_s24  ;;  %p2955_p9 = scmp.lt.u32.totalorder %s2951_s24, %s4190_s7 }
  0x1c   :  { %p2957_p10 = pnand %p2955_p9, %p2952_p8 }
  0x1e   :  { %2960 = shalt.err (!%p2957_p10)
}
  0x1f   :  { %s2961_s5 = scalar_lea.vmem %s85_s18, 3072  ;;  %p2966_p12 = scmp.lt.s32.totalorder %s85_s18, %s85_s18 }
  0x20   :  { %p2962_p11 = scmp.ne.s32.totalorder %s85_s18, %s2961_s5  ;;  %p2967_p13 = scmp.lt.s32.totalorder %s2961_s5, %s2961_s5 }
  0x22   :  { %p2968_p0 = por %p2967_p13, %p2966_p12 }
  0x24   :  { %p2969_p1 = pnand %p2968_p0, %p2962_p11 }
  0x26   :  { %2972 = shalt.err (!%p2969_p1)
}
  0x27   :  { %90 = dma.hbm_to_vmem [thread:$0]  %s4190_s7, 3072, %s85_s18, [#allocation15], %s3338_s13, %s3338_s13, %s3339_s14  }
  0x28   :  { %s33_s16 = sshll.u32 %s4184_s1, 4  ;;  %s2973_s21 = scalar_lea.hbm %s4192_s9, 16  ;;  %s34_s16 = int_to_ptr.vmem [resolvable:$true] %s33_s16 }
  0x29   :  { %p2974_p2 = scmp.ne.s32.totalorder %s4192_s9, %s2973_s21  ;;  %p2977_p3 = scmp.lt.u32.totalorder %s2973_s21, %s4192_s9 }
  0x2b   :  { %p2979_p4 = pnand %p2977_p3, %p2974_p2 }
  0x2d   :  { %2982 = shalt.err (!%p2979_p4)
}
  0x2e   :  { %s2983_s7 = scalar_lea.vmem %s108_s20, 16  ;;  %s2987_s13 = scalar_lea.vmem %s108_s20, 32 }
  0x2f   :  { %p2984_p5 = scmp.ne.s32.totalorder %s108_s20, %s2983_s7  ;;  %p2988_p6 = scmp.lt.s32.totalorder %s108_s20, %s108_s20 }
  0x30   :  { %p2989_p7 = scmp.lt.s32.totalorder %s2987_s13, %s2983_s7 }
  0x32   :  { %p2990_p8 = por %p2989_p7, %p2988_p6 }
  0x34   :  { %p2991_p9 = pnand %p2990_p8, %p2984_p5 }
  0x36   :  { %2994 = shalt.err (!%p2991_p9)
}
  0x37   :  { %110 = dma.hbm_to_vmem [thread:$0]  %s4192_s9, 16, %s108_s20, [#allocation18]  }
  0x38   :  { %s2995_s18 = scalar_lea.vmem %s34_s16, 16  ;;  %p3000_p11 = scmp.lt.s32.totalorder %s34_s16, %s34_s16 }
  0x39   :  { %p2996_p10 = scmp.ne.s32.totalorder %s34_s16, %s2995_s18  ;;  %p3001_p12 = scmp.lt.s32.totalorder %s2995_s18, %s2995_s18 }
  0x3b   :  { %p3002_p13 = por %p3001_p12, %p3000_p11 }
  0x3d   :  { %p3003_p0 = pnand %p3002_p13, %p2996_p10 }
  0x3f   :  { %3006 = shalt.err (!%p3003_p0)
}
  0x40   :  { %s3342_s27 = smov [#allocation5]   ;;  %s43_s22 = sshll.u32 %s4185_s2, 4  ;;  %s44_s22 = int_to_ptr.vmem [resolvable:$true] %s43_s22 }
  0x41   :  { %36 = dma.vmem_to_smem %s34_s16, 16, %s3342_s27, [#allocation7]  }
  0x42   :  { %s3007_s29 = scalar_lea.vmem %s44_s22, 16  ;;  %p3012_p2 = scmp.lt.s32.totalorder %s44_s22, %s44_s22 }
  0x43   :  { %p3008_p1 = scmp.ne.s32.totalorder %s44_s22, %s3007_s29  ;;  %p3013_p3 = scmp.lt.s32.totalorder %s3007_s29, %s3007_s29 }
  0x45   :  { %p3014_p4 = por %p3013_p3, %p3012_p2 }
  0x47   :  { %p3015_p5 = pnand %p3014_p4, %p3008_p1 }
  0x49   :  { %3018 = shalt.err (!%p3015_p5)
}
  0x4a   :  { %s3343_s9 = smov [#allocation8]   ;;  %s3344_s20 = smov [#allocation10]  }
  0x4b   :  { %46 = dma.vmem_to_smem %s44_s22, 16, %s3343_s9, [#allocation9]  }
  0x4c   :  { %s53_s30 = sshll.u32 %s3344_s20, 4  ;;  %s3345_s15 = smov [#allocation13]   ;;  %s54_s30 = int_to_ptr.vmem [resolvable:$true] %s53_s30 }
  0x4d   :  { %s75_s17 = sshll.u32 %s3345_s15, 4  ;;  %s3019_s21 = scalar_lea.hbm %s4187_s4, 384  ;;  %s76_s17 = int_to_ptr.vmem [resolvable:$true] %s75_s17 }
  0x4e   :  { %p3020_p6 = scmp.ne.s32.totalorder %s4187_s4, %s3019_s21  ;;  %p3023_p7 = scmp.lt.u32.totalorder %s3019_s21, %s4187_s4 }
  0x50   :  { %p3025_p8 = pnand %p3023_p7, %p3020_p6 }
  0x52   :  { %3028 = shalt.err (!%p3025_p8)
}
  0x53   :  { %s3029_s26 = scalar_lea.vmem %s54_s30, 384  ;;  %p3034_p10 = scmp.lt.s32.totalorder %s54_s30, %s54_s30 }
  0x54   :  { %p3030_p9 = scmp.ne.s32.totalorder %s54_s30, %s3029_s26  ;;  %p3035_p11 = scmp.lt.s32.totalorder %s3029_s26, %s3029_s26 }
  0x56   :  { %p3036_p12 = por %p3035_p11, %p3034_p10 }
  0x58   :  { %p3037_p13 = pnand %p3036_p12, %p3030_p9 }
  0x5a   :  { %3040 = shalt.err (!%p3037_p13)
}
  0x5b   :  { %56 = dma.hbm_to_vmem [thread:$0]  %s4187_s4, 384, %s54_s30, [#allocation6]  }
  0x5c   :  { %s3041_s18 = scalar_lea.hbm %s4189_s6, 48 }
  0x5d   :  { %p3042_p0 = scmp.ne.s32.totalorder %s4189_s6, %s3041_s18  ;;  %p3045_p1 = scmp.lt.u32.totalorder %s3041_s18, %s4189_s6 }
  0x5f   :  { %p3047_p2 = pnand %p3045_p1, %p3042_p0 }
  0x61   :  { %3050 = shalt.err (!%p3047_p2)
}
  0x62   :  { %s3051_s29 = scalar_lea.vmem %s76_s17, 48  ;;  %s3055_s9 = scalar_lea.vmem %s76_s17, 64 }
  0x63   :  { %p3052_p3 = scmp.ne.s32.totalorder %s76_s17, %s3051_s29  ;;  %p3056_p4 = scmp.lt.s32.totalorder %s76_s17, %s76_s17 }
  0x64   :  { %p3057_p5 = scmp.lt.s32.totalorder %s3055_s9, %s3051_s29 }
  0x66   :  { %p3058_p6 = por %p3057_p5, %p3056_p4 }
  0x68   :  { %p3059_p7 = pnand %p3058_p6, %p3052_p3 }
  0x6a   :  { %3062 = shalt.err (!%p3059_p7)
}
  0x6b   :  { %78 = dma.hbm_to_vmem [thread:$0]  %s4189_s6, 48, %s76_s17, [#allocation12]  }
  0x6c   :  { %s3346_s30 = smov [#allocation16]   ;;  %s3347_s16 = smov [#allocation19]  }
  0x6d   :  { %s97_s15 = sshll.u32 %s3346_s30, 4  ;;  %s116_s19 = sshll.u32 %s3347_s16, 4  ;;  %s98_s15 = int_to_ptr.vmem [resolvable:$true] %s97_s15  ;;  %s117_s19 = int_to_ptr.vmem [resolvable:$true] %s116_s19 }
  0x6e   :  { %s3063_s23 = scalar_lea.hbm %s4191_s8, 16 }
  0x6f   :  { %p3064_p8 = scmp.ne.s32.totalorder %s4191_s8, %s3063_s23  ;;  %p3067_p9 = scmp.lt.u32.totalorder %s3063_s23, %s4191_s8 }
  0x71   :  { %p3069_p10 = pnand %p3067_p9, %p3064_p8 }
  0x73   :  { %3072 = shalt.err (!%p3069_p10)
}
  0x74   :  { %s3073_s6 = scalar_lea.vmem %s98_s15, 16  ;;  %s3077_s17 = scalar_lea.vmem %s98_s15, 32 }
  0x75   :  { %p3074_p11 = scmp.ne.s32.totalorder %s98_s15, %s3073_s6  ;;  %p3078_p12 = scmp.lt.s32.totalorder %s98_s15, %s98_s15 }
  0x76   :  { %p3079_p13 = scmp.lt.s32.totalorder %s3077_s17, %s3073_s6 }
  0x78   :  { %p3080_p0 = por %p3079_p13, %p3078_p12 }
  0x7a   :  { %p3081_p1 = pnand %p3080_p0, %p3074_p11 }
  0x7c   :  { %3084 = shalt.err (!%p3081_p1)
}
  0x7d   :  { %100 = dma.hbm_to_vmem [thread:$0]  %s4191_s8, 16, %s98_s15, [#allocation15]  }
  0x7e   :  { %s3085_s27 = scalar_lea.hbm %s4193_s10, 1024 }
  0x7f   :  { %p3086_p2 = scmp.ne.s32.totalorder %s4193_s10, %s3085_s27  ;;  %p3089_p3 = scmp.lt.u32.totalorder %s3085_s27, %s4193_s10 }
  0x81   :  { %p3091_p4 = pnand %p3089_p3, %p3086_p2 }
  0x83   :  { %3094 = shalt.err (!%p3091_p4)
}
  0x84   :  { %s3095_s9 = scalar_lea.vmem %s117_s19, 1024  ;;  %p3100_p6 = scmp.lt.s32.totalorder %s117_s19, %s117_s19 }
  0x85   :  { %p3096_p5 = scmp.ne.s32.totalorder %s117_s19, %s3095_s9  ;;  %p3101_p7 = scmp.lt.s32.totalorder %s3095_s9, %s3095_s9 }
  0x87   :  { %p3102_p8 = por %p3101_p7, %p3100_p6 }
  0x89   :  { %p3103_p9 = pnand %p3102_p8, %p3096_p5 }
  0x8b   :  { %3106 = shalt.err (!%p3103_p9)
}
  0x8c   :  { %s3348_s8 = smov 64   ;;  %s3349_s4 = smov 4  }
  0x8d   :  { %122 = dma.hbm_to_vmem [thread:$0]  %s4193_s10, 1024, %s117_s19, [#allocation18], %s3348_s8, %s3348_s8, %s3349_s4  }
  0x8e   :  { %s3350_s15 = smov [#allocation20]   ;;  %s3107_s23 = scalar_lea.hbm %s4194_s11, 16 }
  0x8f   :  { %s129_s16 = sshll.u32 %s3350_s15, 4  ;;  %p3108_p10 = scmp.ne.s32.totalorder %s4194_s11, %s3107_s23  ;;  %s130_s16 = int_to_ptr.vmem [resolvable:$true] %s129_s16 }
  0x90   :  { %p3111_p11 = scmp.lt.u32.totalorder %s3107_s23, %s4194_s11 }
  0x92   :  { %p3113_p12 = pnand %p3111_p11, %p3108_p10 }
  0x94   :  { %3116 = shalt.err (!%p3113_p12)
}
  0x95   :  { %s3117_s6 = scalar_lea.vmem %s130_s16, 16  ;;  %s3121_s10 = scalar_lea.vmem %s130_s16, 32 }
  0x96   :  { %p3118_p13 = scmp.ne.s32.totalorder %s130_s16, %s3117_s6  ;;  %p3122_p0 = scmp.lt.s32.totalorder %s130_s16, %s130_s16 }
  0x97   :  { %p3123_p1 = scmp.lt.s32.totalorder %s3121_s10, %s3117_s6 }
  0x99   :  { %p3124_p2 = por %p3123_p1, %p3122_p0 }
  0x9b   :  { %p3125_p3 = pnand %p3124_p2, %p3118_p13 }
  0x9d   :  { %3128 = shalt.err (!%p3125_p3)
}
  0x9e   :  { %132 = dma.hbm_to_vmem [thread:$0]  %s4194_s11, 16, %s130_s16, [#allocation21]  }
  0x9f   :  { %3321 = dma.done.wait [#allocation7], 16  }
  0xa0   :  { %3322 = vsyncadd [#allocation7], 4294967280 }
  0xa1   :  { %3323 = dma.done.wait [#allocation9], 16  }
  0xa2   :  { %3324 = vsyncadd [#allocation9], 4294967280 }
  0xa3   :  { %3325 = dma.done.wait [#allocation6], 384  }
  0xa4   :  { %3326 = vsyncadd [#allocation6], 4294966912 }
  0xa5   :  { %3327 = dma.done.wait [#allocation12], 3120  }
  0xa6   :  { %3328 = vsyncadd [#allocation12], 4294964176 }
  0xa7   :  { %3329 = dma.done.wait [#allocation15], 3088  }
  0xa8   :  { %3330 = vsyncadd [#allocation15], 4294964208 }
  0xa9   :  { %3331 = dma.done.wait [#allocation18], 1040  }
  0xaa   :  { %3332 = vsyncadd [#allocation18], 4294966256 }
  0xab   :  { %3333 = dma.done.wait [#allocation21], 16  }
  0xac   :  { %3334 = vsyncadd [#allocation21], 4294967280 }
  0xad   :  { %163 = sfence }
  0xae   :  { %s3529_s13 = sld [smem:[#allocation8]]  ;;  %s3531_s1 = sld [smem:[#allocation8 + $0x1]]  ;;  %v366_v0 = vlaneseq  ;;  %v3351_v1 = vmov 0.0   ;;  %v3553_v6 = vld [vmem:[#allocation16] sm:$0x1]  ;;  %vm493_vm0 = vcmask 1040384  }
  0xaf   :  { %2516 = vmatprep.subr.bf16.mxu1 %v3351_v1  ;;  %s3534_s11 = sld [smem:[#allocation8 + $0x2]]  ;;  %s3536_s14 = sld [smem:[#allocation8 + $0x3]]  ;;  %v2741_v7 = vld [vmem:[#allocation14 + $0x4] ss:$12 sps:$4 sm:$0xff]   ;;  %vm3352_vm1 = vmmov 0   ;;  %v3353_v8 = vmov 0  }
  0xb0   :  { %s3538_s18 = sld [smem:[#allocation8 + $0x4]]  ;;  %s3540_s27 = sld [smem:[#allocation8 + $0x5]]  ;;  %v367_v2 = vshrl.u32 %v366_v0, 7  ;;  %2532 = vmatprep.mubr.msk.bf16.mxu1 %vm3352_vm1, %v3351_v1  ;;  %716 = vmatprep.mubr.bf16.mxu0 %v3353_v8  ;;  %v2743_v9 = vld [vmem:[#allocation14 + $0x8] ss:$12 sps:$4 sm:$0xff]   ;;  %vm497_vm2 = vcmask 1041408  }
  0xb1   :  { %s3543_s28 = sld [smem:[#allocation8 + $0x6]]  ;;  %s3545_s5 = sld [smem:[#allocation8 + $0x7]]  ;;  %684 = vmatprep.subr.bf16.mxu0 %v2741_v7  ;;  %v2744_v10 = vld [vmem:[#allocation14] ss:$12 sps:$4 sm:$0xff]   ;;  %v2745_v11 = vld [vmem:[#allocation14 + $0x1c] ss:$12 sps:$4 sm:$0xff]   ;;  %2517 = vmatpush3.bf16.msra.mxu1 %v2743_v9 }
  0xb2   :  { %v3547_v3 = vsub.s32 0, %v367_v2  ;;  %v3549_v4 = vsub.s32 1, %v367_v2  ;;  %v3551_v5 = vsub.s32 2, %v367_v2  ;;  %685 = vmatpush1.bf16.msra.mxu0 %v2744_v10  ;;  %vm501_vm3 = vcmask 1042432   ;;  %2518 = vmatprep.subr.bf16.mxu1 %v3351_v1  ;;  %v2747_v12 = vld [vmem:[#allocation14 + $0x20] ss:$12 sps:$4 sm:$0xff]  }
  0xb3   :  { %686 = vmatprep.subr.bf16.mxu0 %v2745_v11  ;;  %v2748_v13 = vld [vmem:[#allocation14 + $0x18] ss:$12 sps:$4 sm:$0xff]   ;;  %vm505_vm4 = vcmask 1043456   ;;  %v2749_v22 = vld [vmem:[#allocation14 + $0x34] ss:$12 sps:$4 sm:$0xff]   ;;  %vm509_vm5 = vcmask 1044480  }
  0xb4   :  { %s286_s22 = sshra.s32 %s3529_s13, 3  ;;  %s289_s29 = sand.u32 7, %s3529_s13  ;;  %v2751_v23 = vld [vmem:[#allocation14 + $0x38] ss:$12 sps:$4 sm:$0xff]   ;;  %v2752_v24 = vld [vmem:[#allocation14 + $0x30] ss:$12 sps:$4 sm:$0xff]  }
  0xb5   :  { %s2314_s9 = smul.u32 24, %s286_s22  ;;  %s296_s8 = sshra.s32 %s3531_s1, 3  ;;  %2519 = vmatpush3.bf16.msra.mxu1 %v2747_v12  ;;  %v2753_v25 = vld [vmem:[#allocation14 + $0x4c] ss:$12 sps:$4 sm:$0xff]   ;;  %v2755_v40 = vld [vmem:[#allocation14 + $0x50] ss:$12 sps:$4 sm:$0xff]  }
  0xb6   :  { %s299_s4 = sand.u32 7, %s3531_s1  ;;  %s2316_s20 = smul.u32 24, %s296_s8  ;;  %687 = vmatpush1.bf16.msra.mxu0 %v2748_v13  ;;  %2520 = vmatprep.subr.bf16.mxu1 %v3351_v1  ;;  %v2756_v41 = vld [vmem:[#allocation14 + $0x48] ss:$12 sps:$4 sm:$0xff]   ;;  %v2757_v42 = vld [vmem:[#allocation14 + $0x64] ss:$12 sps:$4 sm:$0xff]  }
  0xb7   :  { %s292_s30 = sadd.s32 %s2314_s9, %s289_s29  ;;  %s306_s15 = sshra.s32 %s3534_s11, 3  ;;  %688 = vmatprep.subr.bf16.mxu0 %v2749_v22  ;;  %v2759_v54 = vld [vmem:[#allocation14 + $0x68] ss:$12 sps:$4 sm:$0xff]   ;;  %v2760_v58 = vld [vmem:[#allocation14 + $0x60] ss:$12 sps:$4 sm:$0xff]   ;;  %vm513_vm6 = vcmask 1045504  }
  0xb8   :  { %s302_s16 = sadd.s32 %s2316_s20, %s299_s4  ;;  %s293_s21 = scalar_lea.vmem [#allocation10], %s292_s30  ;;  %v2761_v59 = vld [vmem:[#allocation14 + $0x7c] ss:$12 sps:$4 sm:$0xff]   ;;  %v2763_v60 = vld [vmem:[#allocation14 + $0x80] ss:$12 sps:$4 sm:$0xff]   ;;  %vm517_vm7 = vcmask 1046528  }
  0xb9   :  { %v294_v14 = vld [vmem:[%s293_s21] ss:$8 sm:$0x7]  ;;  %s309_s2 = sand.u32 7, %s3534_s11  ;;  %s303_s23 = scalar_lea.vmem [#allocation10], %s302_s16  ;;  %2521 = vmatpush3.bf16.msra.mxu1 %v2751_v23 }
  0xba   :  { %v304_v15 = vld [vmem:[%s303_s23] ss:$8 sm:$0x7]  ;;  %s2318_s24 = smul.u32 24, %s306_s15  ;;  %s316_s25 = sshra.s32 %s3536_s14, 3  ;;  %v369_v16 = vrot.slane %v294_v14, %v3547_v3  ;;  %v373_v17 = vrot.slane %v294_v14, %v3549_v4  ;;  %v377_v18 = vrot.slane %v294_v14, %v3551_v5  ;;  %689 = vmatpush1.bf16.msra.mxu0 %v2752_v24  ;;  %2522 = vmatprep.subr.bf16.mxu1 %v3351_v1 }
  0xbb   :  { %s319_s26 = sand.u32 7, %s3536_s14  ;;  %s2320_s7 = smul.u32 24, %s316_s25  ;;  %v385_v19 = vrot.slane %v304_v15, %v3547_v3  ;;  %v389_v20 = vrot.slane %v304_v15, %v3549_v4  ;;  %v393_v21 = vrot.slane %v304_v15, %v3551_v5  ;;  %690 = vmatprep.subr.bf16.mxu0 %v2753_v25  ;;  %v2764_v7 = vld [vmem:[#allocation14 + $0x78] ss:$12 sps:$4 sm:$0xff]   ;;  %v2765_v13 = vld [vmem:[#allocation14 + $0x94] ss:$12 sps:$4 sm:$0xff]  }
  0xbc   :  { %s312_s6 = sadd.s32 %s2318_s24, %s309_s2  ;;  %s326_s10 = sshra.s32 %s3538_s18, 3  ;;  %v2768_v24 = vld [vmem:[#allocation14 + $0x90] ss:$12 sps:$4 sm:$0xff]   ;;  %v2769_v25 = vld [vmem:[#allocation14 + $0xac] ss:$12 sps:$4 sm:$0xff]  }
  0xbd   :  { %s322_s19 = sadd.s32 %s2320_s7, %s319_s26  ;;  %s313_s17 = scalar_lea.vmem [#allocation10], %s312_s6  ;;  %v494_v27 = vsel %vm493_vm0, %v369_v16, %v385_v19  ;;  %v495_v28 = vsel %vm493_vm0, %v373_v17, %v389_v20  ;;  %v496_v29 = vsel %vm493_vm0, %v377_v18, %v393_v21  ;;  %2523 = vmatpush3.bf16.msra.mxu1 %v2755_v40  ;;  %v2767_v20 = vld [vmem:[#allocation14 + $0x98] ss:$12 sps:$4 sm:$0xff]  }
  0xbe   :  { %v314_v26 = vld [vmem:[%s313_s17] ss:$8 sm:$0x7]  ;;  %s329_s13 = sand.u32 7, %s3538_s18  ;;  %s323_s1 = scalar_lea.vmem [#allocation10], %s322_s19  ;;  %691 = vmatpush1.bf16.msra.mxu0 %v2756_v41  ;;  %2524 = vmatprep.subr.bf16.mxu1 %v3351_v1 }
  0xbf   :  { %v324_v30 = vld [vmem:[%s323_s1] ss:$8 sm:$0x7]  ;;  %s2322_s11 = smul.u32 24, %s326_s10  ;;  %s336_s14 = sshra.s32 %s3540_s27, 3  ;;  %v401_v31 = vrot.slane %v314_v26, %v3547_v3  ;;  %v405_v32 = vrot.slane %v314_v26, %v3549_v4  ;;  %v409_v33 = vrot.slane %v314_v26, %v3551_v5  ;;  %692 = vmatprep.subr.bf16.mxu0 %v2757_v42 }
  0xc0   :  { %s339_s18 = sand.u32 7, %s3540_s27  ;;  %s2324_s22 = smul.u32 24, %s336_s14  ;;  %v417_v34 = vrot.slane %v324_v30, %v3547_v3  ;;  %v421_v35 = vrot.slane %v324_v30, %v3549_v4  ;;  %v425_v36 = vrot.slane %v324_v30, %v3551_v5  ;;  %v2771_v26 = vld [vmem:[#allocation14 + $0xb0] ss:$12 sps:$4 sm:$0xff]  }
  0xc1   :  { %s332_s29 = sadd.s32 %s2322_s11, %s329_s13  ;;  %s346_s9 = sshra.s32 %s3543_s28, 3  ;;  %v498_v37 = vsel %vm497_vm2, %v494_v27, %v401_v31  ;;  %v499_v38 = vsel %vm497_vm2, %v495_v28, %v405_v32  ;;  %v500_v39 = vsel %vm497_vm2, %v496_v29, %v409_v33  ;;  %2525 = vmatpush3.bf16.msra.mxu1 %v2759_v54  ;;  %v3632_v27 = vld [vmem:[#allocation17] sm:$0x1]  ;;  %v2772_v28 = vld [vmem:[#allocation14 + $0xa8] ss:$12 sps:$4 sm:$0xff]  }
  0xc2   :  { %s342_s27 = sadd.s32 %s2324_s22, %s339_s18  ;;  %s333_s8 = scalar_lea.vmem [#allocation10], %s332_s29  ;;  %v502_v44 = vsel %vm501_vm3, %v498_v37, %v417_v34  ;;  %v503_v45 = vsel %vm501_vm3, %v499_v38, %v421_v35  ;;  %v504_v46 = vsel %vm501_vm3, %v500_v39, %v425_v36  ;;  %693 = vmatpush1.bf16.msra.mxu0 %v2760_v58  ;;  %2526 = vmatprep.subr.bf16.mxu1 %v3351_v1 }
  0xc3   :  { %v334_v43 = vld [vmem:[%s333_s8] ss:$8 sm:$0x7]  ;;  %s349_s4 = sand.u32 7, %s3543_s28  ;;  %s343_s20 = scalar_lea.vmem [#allocation10], %s342_s27  ;;  %694 = vmatprep.subr.bf16.mxu0 %v2761_v59  ;;  %v523_v29 = vpack.c.bf16 %v3632_v27, %v3632_v27 }
  0xc4   :  { %v344_v47 = vld [vmem:[%s343_s20] ss:$8 sm:$0x7]  ;;  %s2326_s30 = smul.u32 24, %s346_s9  ;;  %s356_s15 = sshra.s32 %s3545_s5, 3  ;;  %v433_v48 = vrot.slane %v334_v43, %v3547_v3  ;;  %v437_v49 = vrot.slane %v334_v43, %v3549_v4  ;;  %v441_v50 = vrot.slane %v334_v43, %v3551_v5 }
  0xc5   :  { %s359_s28 = sand.u32 7, %s3545_s5  ;;  %s2328_s16 = smul.u32 24, %s356_s15  ;;  %v449_v51 = vrot.slane %v344_v47, %v3547_v3  ;;  %v453_v52 = vrot.slane %v344_v47, %v3549_v4  ;;  %v457_v53 = vrot.slane %v344_v47, %v3551_v5  ;;  %2527 = vmatpush3.bf16.msra.mxu1 %v2763_v60 }
  0xc6   :  { %s352_s21 = sadd.s32 %s2326_s30, %s349_s4  ;;  %v506_v55 = vsel %vm505_vm4, %v502_v44, %v433_v48  ;;  %v507_v56 = vsel %vm505_vm4, %v503_v45, %v437_v49  ;;  %v508_v57 = vsel %vm505_vm4, %v504_v46, %v441_v50  ;;  %695 = vmatpush1.bf16.msra.mxu0 %v2764_v7  ;;  %2528 = vmatprep.subr.bf16.mxu1 %v3351_v1  ;;  %s165_s24 = sld [smem:[#allocation5]] }
  0xc7   :  { %s362_s2 = sadd.s32 %s2328_s16, %s359_s28  ;;  %s353_s5 = scalar_lea.vmem [#allocation10], %s352_s21  ;;  %v510_v62 = vsel %vm509_vm5, %v506_v55, %v449_v51  ;;  %v511_v63 = vsel %vm509_vm5, %v507_v56, %v453_v52  ;;  %v512_v2 = vsel %vm509_vm5, %v508_v57, %v457_v53  ;;  %696 = vmatprep.subr.bf16.mxu0 %v2765_v13 }
  0xc8   :  { %v354_v61 = vld [vmem:[%s353_s5] ss:$8 sm:$0x7]  ;;  %s363_s23 = scalar_lea.vmem [#allocation10], %s362_s2  ;;  %s3354_s25 = smov [#allocation2]  }
  0xc9   :  { %v364_v9 = vld [vmem:[%s363_s23] ss:$8 sm:$0x7]  ;;  %v465_v10 = vrot.slane %v354_v61, %v3547_v3  ;;  %v469_v11 = vrot.slane %v354_v61, %v3549_v4  ;;  %v473_v12 = vrot.slane %v354_v61, %v3551_v5  ;;  %s175_s26 = sshll.u32 %s3354_s25, 4  ;;  %s3630_s7 = sld [smem:[#allocation5 + $0x1]]  ;;  %2529 = vmatpush3.bf16.msra.mxu1 %v2767_v20  ;;  %s3628_s26 = int_to_ptr.vmem [resolvable:$true] %s175_s26 }
  0xca   :  { %v481_v14 = vrot.slane %v364_v9, %v3547_v3  ;;  %v485_v15 = vrot.slane %v364_v9, %v3549_v4  ;;  %v489_v16 = vrot.slane %v364_v9, %v3551_v5  ;;  %s3634_s6 = sld [smem:[#allocation5 + $0x2]]  ;;  %697 = vmatpush1.bf16.msra.mxu0 %v2768_v24  ;;  %2530 = vmatprep.subr.bf16.mxu1 %v3351_v1  ;;  %s3355_s10 = smov [#allocation2 + $0x1]  }
  0xcb   :  { %v514_v17 = vsel %vm513_vm6, %v510_v62, %v465_v10  ;;  %v515_v18 = vsel %vm513_vm6, %v511_v63, %v469_v11  ;;  %v516_v19 = vsel %vm513_vm6, %v512_v2, %v473_v12  ;;  %s190_s19 = sshll.u32 %s3355_s10, 4  ;;  %698 = vmatprep.subr.bf16.mxu0 %v2769_v25  ;;  %s3356_s17 = smov [#allocation2 + $0x2]   ;;  %s3637_s19 = int_to_ptr.vmem [resolvable:$true] %s190_s19 }
  0xcc   :  { %v3621_v21 = vsel %vm517_vm7, %v514_v17, %v481_v14  ;;  %v3623_v22 = vsel %vm517_vm7, %v515_v18, %v485_v15  ;;  %v3625_v23 = vsel %vm517_vm7, %v516_v19, %v489_v16  ;;  %s205_s13 = sshll.u32 %s3356_s17, 4  ;;  %s3643_s1 = sld [smem:[#allocation5 + $0x3]]  ;;  %s3641_s13 = int_to_ptr.vmem [resolvable:$true] %s205_s13 }
  0xcd   :  { %2531 = vmatpush3.bf16.msra.mxu1 %v2771_v26  ;;  %s2299_s11 = sshll.u32 %s165_s24, 4  ;;  %s3652_s4 = scalar_lea.hbm %s4186_s3, 176000 }
  0xce   :  { %699 = vmatpush1.bf16.msra.mxu0 %v2772_v28  ;;  %s167_s22 = scalar_lea.hbm %s4186_s3, %s2299_s11 }
  0xcf   :  { %s2301_s29 = sshll.u32 %s3630_s7, 4  ;;  %s3129_s9 = scalar_lea.hbm %s167_s22, 16 }
  0xd0   :  { %p3130_p4 = scmp.ne.s32.totalorder %s167_s22, %s3129_s9  ;;  %p3132_p5 = scmp.lt.u32.totalorder %s167_s22, %s4186_s3 }
  0xd1   :  { %p3133_p6 = scmp.lt.u32.totalorder %s3652_s4, %s3129_s9  ;;  %p3135_p8 = scmp.lt.u32.totalorder %s3129_s9, %s167_s22 }
  0xd3   :  { %p3134_p7 = por %p3133_p6, %p3132_p5 }
  0xd5   :  { %p3136_p9 = por %p3135_p8, %p3134_p7 }
  0xd7   :  { %p3137_p10 = pnand %p3136_p9, %p3130_p4 }
  0xd9   :  { %3140 = shalt.err (!%p3137_p10)  }
  0xda   :  { %s3141_s15 = scalar_lea.vmem %s3628_s26, 16  ;;  %s3661_s28 = scalar_lea.vmem %s3628_s26, 128 }
  0xdb   :  { %p3142_p11 = scmp.ne.s32.totalorder %s3628_s26, %s3141_s15  ;;  %p3146_p12 = scmp.lt.s32.totalorder %s3628_s26, %s3628_s26 }
  0xdc   :  { %p3147_p13 = scmp.lt.s32.totalorder %s3661_s28, %s3141_s15 }
  0xde   :  { %p3148_p0 = por %p3147_p13, %p3146_p12 }
  0xe0   :  { %p3149_p1 = pnand %p3148_p0, %p3142_p11 }
  0xe2   :  { %3152 = shalt.err (!%p3149_p1)  }
  0xe3   :  { %178 = dma.hbm_to_vmem [thread:$0]  %s167_s22, 16, %s3628_s26, [#allocation3]  ;;  %2533 = vmatmul.mubr.bf16.vlgmr.msra.gmra.mrb[0].mxu1 %v523_v29  ;;  %717 = vmatmul.mubr.bf16.vlgmr.msra.gmra.mrb[0].mxu0 %v523_v29 }
  0xe4   :  { %s181_s2 = scalar_lea.hbm %s4186_s3, %s2301_s29  ;;  %s2303_s5 = sshll.u32 %s3634_s6, 4 }
  0xe5   :  { %s3153_s23 = scalar_lea.hbm %s181_s2, 16  ;;  %p3156_p3 = scmp.lt.u32.totalorder %s181_s2, %s4186_s3 }
  0xe6   :  { %p3154_p2 = scmp.ne.s32.totalorder %s181_s2, %s3153_s23  ;;  %p3157_p4 = scmp.lt.u32.totalorder %s3652_s4, %s3153_s23 }
  0xe7   :  { %p3159_p6 = scmp.lt.u32.totalorder %s3153_s23, %s181_s2 }
  0xe8   :  { %p3158_p5 = por %p3157_p4, %p3156_p3 }
  0xea   :  { %p3160_p7 = por %p3159_p6, %p3158_p5 }
  0xec   :  { %p3161_p8 = pnand %p3160_p7, %p3154_p2 }
  0xee   :  { %3164 = shalt.err (!%p3161_p8)  }
  0xef   :  { %s3165_s7 = scalar_lea.vmem %s3637_s19, 16  ;;  %p3170_p10 = scmp.lt.s32.totalorder %s3637_s19, %s3628_s26 }
  0xf0   :  { %p3166_p9 = scmp.ne.s32.totalorder %s3637_s19, %s3165_s7  ;;  %p3171_p11 = scmp.lt.s32.totalorder %s3661_s28, %s3165_s7 }
  0xf2   :  { %p3172_p12 = por %p3171_p11, %p3170_p10 }
  0xf4   :  { %p3173_p13 = pnand %p3172_p12, %p3166_p9 }
  0xf6   :  { %3176 = shalt.err (!%p3173_p13)  }
  0xf7   :  { %193 = dma.hbm_to_vmem [thread:$0]  %s181_s2, 16, %s3637_s19, [#allocation3] }
  0xf8   :  { %s196_s17 = scalar_lea.hbm %s4186_s3, %s2303_s5  ;;  %s2305_s11 = sshll.u32 %s3643_s1, 4 }
  0xf9   :  { %s3177_s14 = scalar_lea.hbm %s196_s17, 16  ;;  %p3180_p1 = scmp.lt.u32.totalorder %s196_s17, %s4186_s3 }
  0xfa   :  { %p3178_p0 = scmp.ne.s32.totalorder %s196_s17, %s3177_s14  ;;  %p3181_p2 = scmp.lt.u32.totalorder %s3652_s4, %s3177_s14 }
  0xfb   :  { %p3183_p4 = scmp.lt.u32.totalorder %s3177_s14, %s196_s17 }
  0xfc   :  { %p3182_p3 = por %p3181_p2, %p3180_p1 }
  0xfe   :  { %p3184_p5 = por %p3183_p4, %p3182_p3 }
 0x100   :  { %p3185_p6 = pnand %p3184_p5, %p3178_p0 }
 0x102   :  { %3188 = shalt.err (!%p3185_p6)  }
 0x103   :  { %s3189_s19 = scalar_lea.vmem %s3641_s13, 16  ;;  %p3194_p8 = scmp.lt.s32.totalorder %s3641_s13, %s3628_s26 }
 0x104   :  { %p3190_p7 = scmp.ne.s32.totalorder %s3641_s13, %s3189_s19  ;;  %p3195_p9 = scmp.lt.s32.totalorder %s3661_s28, %s3189_s19 }
 0x106   :  { %p3196_p10 = por %p3195_p9, %p3194_p8 }
 0x108   :  { %p3197_p11 = pnand %p3196_p10, %p3190_p7 }
 0x10a   :  { %3200 = shalt.err (!%p3197_p11)  }
 0x10b   :  { %208 = dma.hbm_to_vmem [thread:$0]  %s196_s17, 16, %s3641_s13, [#allocation3] }
 0x10c   :  { %s211_s9 = scalar_lea.hbm %s4186_s3, %s2305_s11  ;;  %s3357_s27 = smov [#allocation2 + $0x3]  }
 0x10d   :  { %s220_s8 = sshll.u32 %s3357_s27, 4  ;;  %s3201_s20 = scalar_lea.hbm %s211_s9, 16  ;;  %s221_s8 = int_to_ptr.vmem [resolvable:$true] %s220_s8 }
 0x10e   :  { %p3202_p12 = scmp.ne.s32.totalorder %s211_s9, %s3201_s20  ;;  %p3204_p13 = scmp.lt.u32.totalorder %s211_s9, %s4186_s3 }
 0x10f   :  { %p3205_p0 = scmp.lt.u32.totalorder %s3652_s4, %s3201_s20  ;;  %p3207_p2 = scmp.lt.u32.totalorder %s3201_s20, %s211_s9 }
 0x111   :  { %p3206_p1 = por %p3205_p0, %p3204_p13 }
 0x113   :  { %p3208_p3 = por %p3207_p2, %p3206_p1 }
 0x115   :  { %p3209_p4 = pnand %p3208_p3, %p3202_p12 }
 0x117   :  { %3212 = shalt.err (!%p3209_p4)  }
 0x118   :  { %s3213_s13 = scalar_lea.vmem %s221_s8, 16  ;;  %p3218_p6 = scmp.lt.s32.totalorder %s221_s8, %s3628_s26 }
 0x119   :  { %p3214_p5 = scmp.ne.s32.totalorder %s221_s8, %s3213_s13  ;;  %p3219_p7 = scmp.lt.s32.totalorder %s3661_s28, %s3213_s13 }
 0x11b   :  { %p3220_p8 = por %p3219_p7, %p3218_p6 }
 0x11d   :  { %p3221_p9 = pnand %p3220_p8, %p3214_p5 }
 0x11f   :  { %3224 = shalt.err (!%p3221_p9)  }
 0x120   :  { %223 = dma.hbm_to_vmem [thread:$0]  %s211_s9, 16, %s221_s8, [#allocation3] }
 0x121   :  { %s2306_s16 = sld [smem:[#allocation5 + $0x4]]  ;;  %s2308_s21 = sld [smem:[#allocation5 + $0x5]] }
 0x122   :  { %s3704_s2 = sld [smem:[#allocation5 + $0x6]]  ;;  %s3706_s5 = sld [smem:[#allocation5 + $0x7]] }
 0x123   :  { %s3358_s24 = smov [#allocation2 + $0x4]  }
 0x124   :  { %s235_s25 = sshll.u32 %s3358_s24, 4  ;;  %s236_s25 = int_to_ptr.vmem [resolvable:$true] %s235_s25 }
 0x127   :  { %s2307_s23 = sshll.u32 %s2306_s16, 4 }
 0x128   :  { %s226_s10 = scalar_lea.hbm %s4186_s3, %s2307_s23 }
 0x129   :  { %s3225_s17 = scalar_lea.hbm %s226_s10, 16  ;;  %p3228_p11 = scmp.lt.u32.totalorder %s226_s10, %s4186_s3 }
 0x12a   :  { %p3226_p10 = scmp.ne.s32.totalorder %s226_s10, %s3225_s17  ;;  %p3229_p12 = scmp.lt.u32.totalorder %s3652_s4, %s3225_s17 }
 0x12b   :  { %p3231_p0 = scmp.lt.u32.totalorder %s3225_s17, %s226_s10 }
 0x12c   :  { %p3230_p13 = por %p3229_p12, %p3228_p11 }
 0x12e   :  { %p3232_p1 = por %p3231_p0, %p3230_p13 }
 0x130   :  { %p3233_p2 = pnand %p3232_p1, %p3226_p10 }
 0x132   :  { %3236 = shalt.err (!%p3233_p2)  }
 0x133   :  { %s3237_s18 = scalar_lea.vmem %s236_s25, 16  ;;  %p3242_p4 = scmp.lt.s32.totalorder %s236_s25, %s3628_s26 }
 0x134   :  { %p3238_p3 = scmp.ne.s32.totalorder %s236_s25, %s3237_s18  ;;  %p3243_p5 = scmp.lt.s32.totalorder %s3661_s28, %s3237_s18 }
 0x136   :  { %p3244_p6 = por %p3243_p5, %p3242_p4 }
 0x138   :  { %p3245_p7 = pnand %p3244_p6, %p3238_p3 }
 0x13a   :  { %3248 = shalt.err (!%p3245_p7)  }
 0x13b   :  { %238 = dma.hbm_to_vmem [thread:$0]  %s226_s10, 16, %s236_s25, [#allocation3] }
 0x13c   :  { %s2309_s22 = sshll.u32 %s2308_s21, 4  ;;  %s3359_s9 = smov [#allocation2 + $0x5]  }
 0x13d   :  { %s241_s29 = scalar_lea.hbm %s4186_s3, %s2309_s22  ;;  %s250_s27 = sshll.u32 %s3359_s9, 4  ;;  %s251_s27 = int_to_ptr.vmem [resolvable:$true] %s250_s27 }
 0x13e   :  { %s2311_s8 = sshll.u32 %s3704_s2, 4  ;;  %s3249_s20 = scalar_lea.hbm %s241_s29, 16 }
 0x13f   :  { %p3250_p8 = scmp.ne.s32.totalorder %s241_s29, %s3249_s20  ;;  %p3252_p9 = scmp.lt.u32.totalorder %s241_s29, %s4186_s3 }
 0x140   :  { %p3253_p10 = scmp.lt.u32.totalorder %s3652_s4, %s3249_s20  ;;  %p3255_p12 = scmp.lt.u32.totalorder %s3249_s20, %s241_s29 }
 0x142   :  { %p3254_p11 = por %p3253_p10, %p3252_p9 }
 0x144   :  { %p3256_p13 = por %p3255_p12, %p3254_p11 }
 0x146   :  { %p3257_p0 = pnand %p3256_p13, %p3250_p8 }
 0x148   :  { %3260 = shalt.err (!%p3257_p0)  }
 0x149   :  { %s3261_s13 = scalar_lea.vmem %s251_s27, 16  ;;  %p3266_p2 = scmp.lt.s32.totalorder %s251_s27, %s3628_s26 }
 0x14a   :  { %p3262_p1 = scmp.ne.s32.totalorder %s251_s27, %s3261_s13  ;;  %p3267_p3 = scmp.lt.s32.totalorder %s3661_s28, %s3261_s13 }
 0x14c   :  { %p3268_p4 = por %p3267_p3, %p3266_p2 }
 0x14e   :  { %p3269_p5 = pnand %p3268_p4, %p3262_p1 }
 0x150   :  { %3272 = shalt.err (!%p3269_p5)  }
 0x151   :  { %253 = dma.hbm_to_vmem [thread:$0]  %s241_s29, 16, %s251_s27, [#allocation3] }
 0x152   :  { %s256_s2 = scalar_lea.hbm %s4186_s3, %s2311_s8  ;;  %s3360_s23 = smov [#allocation2 + $0x6]  }
 0x153   :  { %s265_s24 = sshll.u32 %s3360_s23, 4  ;;  %s2313_s25 = sshll.u32 %s3706_s5, 4  ;;  %s266_s24 = int_to_ptr.vmem [resolvable:$true] %s265_s24 }
 0x154   :  { %s3273_s7 = scalar_lea.hbm %s256_s2, 16  ;;  %p3276_p7 = scmp.lt.u32.totalorder %s256_s2, %s4186_s3 }
 0x155   :  { %p3274_p6 = scmp.ne.s32.totalorder %s256_s2, %s3273_s7  ;;  %p3277_p8 = scmp.lt.u32.totalorder %s3652_s4, %s3273_s7 }
 0x156   :  { %p3279_p10 = scmp.lt.u32.totalorder %s3273_s7, %s256_s2 }
 0x157   :  { %p3278_p9 = por %p3277_p8, %p3276_p7 }
 0x159   :  { %p3280_p11 = por %p3279_p10, %p3278_p9 }
 0x15b   :  { %p3281_p12 = pnand %p3280_p11, %p3274_p6 }
 0x15d   :  { %3284 = shalt.err (!%p3281_p12)  }
 0x15e   :  { %s3285_s17 = scalar_lea.vmem %s266_s24, 16  ;;  %p3290_p0 = scmp.lt.s32.totalorder %s266_s24, %s3628_s26 }
 0x15f   :  { %p3286_p13 = scmp.ne.s32.totalorder %s266_s24, %s3285_s17  ;;  %p3291_p1 = scmp.lt.s32.totalorder %s3661_s28, %s3285_s17 }
 0x161   :  { %p3292_p2 = por %p3291_p1, %p3290_p0 }
 0x163   :  { %p3293_p3 = pnand %p3292_p2, %p3286_p13 }
 0x165   :  { %3296 = shalt.err (!%p3293_p3)  }
 0x166   :  { %268 = dma.hbm_to_vmem [thread:$0]  %s256_s2, 16, %s266_s24, [#allocation3] }
 0x167   :  { %s271_s14 = scalar_lea.hbm %s4186_s3, %s2313_s25  ;;  %s3361_s18 = smov [#allocation2 + $0x7]  }
 0x168   :  { %s280_s22 = sshll.u32 %s3361_s18, 4  ;;  %s3297_s19 = scalar_lea.hbm %s271_s14, 16  ;;  %s281_s22 = int_to_ptr.vmem [resolvable:$true] %s280_s22 }
 0x169   :  { %p3298_p4 = scmp.ne.s32.totalorder %s271_s14, %s3297_s19  ;;  %p3300_p5 = scmp.lt.u32.totalorder %s271_s14, %s4186_s3 }
 0x16a   :  { %p3301_p6 = scmp.lt.u32.totalorder %s3652_s4, %s3297_s19  ;;  %p3303_p8 = scmp.lt.u32.totalorder %s3297_s19, %s271_s14 }
 0x16c   :  { %p3302_p7 = por %p3301_p6, %p3300_p5 }
 0x16e   :  { %p3304_p9 = por %p3303_p8, %p3302_p7 }
 0x170   :  { %p3305_p10 = pnand %p3304_p9, %p3298_p4 }
 0x172   :  { %3308 = shalt.err (!%p3305_p10)  }
 0x173   :  { %s3309_s9 = scalar_lea.vmem %s281_s22, 16  ;;  %p3314_p12 = scmp.lt.s32.totalorder %s281_s22, %s3628_s26 }
 0x174   :  { %p3310_p11 = scmp.ne.s32.totalorder %s281_s22, %s3309_s9  ;;  %p3315_p13 = scmp.lt.s32.totalorder %s3661_s28, %s3309_s9 }
 0x176   :  { %p3316_p0 = por %p3315_p13, %p3314_p12 }
 0x178   :  { %p3317_p1 = pnand %p3316_p0, %p3310_p11 }
 0x17a   :  { %3320 = shalt.err (!%p3317_p1)  }
 0x17b   :  { %283 = dma.hbm_to_vmem [thread:$0]  %s271_s14, 16, %s281_s22, [#allocation3] }
 0x1b6   :  { %v3746_v30 = vpop.f32.mrb[0].mxu1  ;;  %v3748_v31 = vpop.f32.mrb[0].mxu0 }
 0x1b7   :  { %v2534_v32 = vpop.f32.mrb[1].mxu1  ;;  %v3750_v33 = vpop.f32.mrb[1].mxu0 }
 0x1b8   :  { %v762_v34 = vpop.f32.mrb[2].mxu1  ;;  %v722_v35 = vpop.f32.mrb[2].mxu0 }
 0x1b9   :  { %v2535_v36 = vpop.f32.mrb[3].mxu1  ;;  %v723_v37 = vpop.f32.mrb[3].mxu0 }
 0x1ba   :  { %3335 = dma.done.wait [#allocation3], 128 }
 0x1bb   :  { %3336 = vsyncadd [#allocation3], 4294967168  ;;  %2536 = vmatprep.subr.bf16.mxu1 %v3351_v1  ;;  %993 = vmatprep.mubr.bf16.mxu0 %v3353_v8  ;;  %v2773_v38 = vld [vmem:[#allocation11 + $0x4] ss:$12 sps:$4 sm:$0xff]   ;;  %v2775_v39 = vld [vmem:[#allocation11] ss:$12 sps:$4 sm:$0xff]  }
 0x1bc   :  { %2552 = vmatprep.mubr.msk.bf16.mxu1 %vm3352_vm1, %v3351_v1  ;;  %961 = vmatprep.subr.bf16.mxu0 %v2773_v38  ;;  %v2776_v40 = vld [vmem:[#allocation11 + $0x1c] ss:$12 sps:$4 sm:$0xff]   ;;  %v2778_v41 = vld [vmem:[#allocation11 + $0x18] ss:$12 sps:$4 sm:$0xff]   ;;  %v2779_v42 = vld [vmem:[#allocation11 + $0x34] ss:$12 sps:$4 sm:$0xff]  }
 0x1bd   :  { %962 = vmatpush1.bf16.msra.mxu0 %v2775_v39  ;;  %v2781_v43 = vld [vmem:[#allocation11 + $0x30] ss:$12 sps:$4 sm:$0xff]   ;;  %v2782_v44 = vld [vmem:[#allocation11 + $0x4c] ss:$12 sps:$4 sm:$0xff]   ;;  %v2784_v45 = vld [vmem:[#allocation11 + $0x48] ss:$12 sps:$4 sm:$0xff]  }
 0x1be   :  { %963 = vmatprep.subr.bf16.mxu0 %v2776_v40  ;;  %v2796_v46 = vld [vmem:[#allocation11 + $0x8] ss:$12 sps:$4 sm:$0xff]   ;;  %v2785_v47 = vld [vmem:[#allocation11 + $0x64] ss:$12 sps:$4 sm:$0xff]   ;;  %v2798_v48 = vld [vmem:[#allocation11 + $0x20] ss:$12 sps:$4 sm:$0xff]  }
 0x1bf   :  { %2537 = vmatpush3.bf16.msra.mxu1 %v2796_v46  ;;  %v2787_v49 = vld [vmem:[#allocation11 + $0x60] ss:$12 sps:$4 sm:$0xff]   ;;  %v2788_v50 = vld [vmem:[#allocation11 + $0x7c] ss:$12 sps:$4 sm:$0xff]   ;;  %v2790_v51 = vld [vmem:[#allocation11 + $0x78] ss:$12 sps:$4 sm:$0xff]  }
 0x1c0   :  { %2538 = vmatprep.subr.bf16.mxu1 %v3351_v1  ;;  %v2799_v52 = vld [vmem:[#allocation11 + $0x38] ss:$12 sps:$4 sm:$0xff]   ;;  %v2791_v53 = vld [vmem:[#allocation11 + $0x94] ss:$12 sps:$4 sm:$0xff]   ;;  %v2800_v54 = vld [vmem:[#allocation11 + $0x50] ss:$12 sps:$4 sm:$0xff]  }
 0x1c1   :  { %964 = vmatpush1.bf16.msra.mxu0 %v2778_v41  ;;  %v2793_v55 = vld [vmem:[#allocation11 + $0x90] ss:$12 sps:$4 sm:$0xff]   ;;  %v2794_v56 = vld [vmem:[#allocation11 + $0xac] ss:$12 sps:$4 sm:$0xff]   ;;  %v2801_v57 = vld [vmem:[#allocation11 + $0x68] ss:$12 sps:$4 sm:$0xff]  }
 0x1c2   :  { %965 = vmatprep.subr.bf16.mxu0 %v2779_v42  ;;  %v2797_v58 = vld [vmem:[#allocation11 + $0xa8] ss:$12 sps:$4 sm:$0xff]   ;;  %v782_v59 = vld [vmem:[#allocation2] sm:$0xff]  ;;  %v2804_v63 = vld [vmem:[#allocation11 + $0xb0] ss:$12 sps:$4 sm:$0xff]   ;;  %p1067_p2 = scmp.gt.s32.totalorder %s4183_s0, 0 }
 0x1c3   :  { %2539 = vmatpush3.bf16.msra.mxu1 %v2798_v48  ;;  %v2802_v60 = vld [vmem:[#allocation11 + $0x80] ss:$12 sps:$4 sm:$0xff]   ;;  %v783_v61 = vpack.c.bf16 %v782_v59, %v782_v59  ;;  %v2803_v62 = vld [vmem:[#allocation11 + $0x98] ss:$12 sps:$4 sm:$0xff]   ;;  %v3767_v2 = vld [vmem:[#allocation14 + $0x4] ss:$12 sps:$4 sm:$0xff]  }
 0x1c4   :  { %2540 = vmatprep.subr.bf16.mxu1 %v3351_v1  ;;  %v3769_v7 = vld [vmem:[#allocation14] ss:$12 sps:$4 sm:$0xff]   ;;  %v3771_v9 = vld [vmem:[#allocation14 + $0x8] ss:$12 sps:$4 sm:$0xff]   ;;  %v3781_v12 = vld [vmem:[#allocation14 + $0x18] ss:$12 sps:$4 sm:$0xff]  }
 0x1c5   :  { %966 = vmatpush1.bf16.msra.mxu0 %v2781_v43  ;;  %v3773_v10 = vld [vmem:[#allocation14 + $0x1c] ss:$12 sps:$4 sm:$0xff]   ;;  %v3777_v11 = vld [vmem:[#allocation14 + $0x20] ss:$12 sps:$4 sm:$0xff]   ;;  %v3787_v14 = vld [vmem:[#allocation14 + $0x38] ss:$12 sps:$4 sm:$0xff]  }
 0x1c6   :  { %967 = vmatprep.subr.bf16.mxu0 %v2782_v44  ;;  %v3784_v13 = vld [vmem:[#allocation14 + $0x34] ss:$12 sps:$4 sm:$0xff]   ;;  %v3791_v15 = vld [vmem:[#allocation14 + $0x30] ss:$12 sps:$4 sm:$0xff]   ;;  %v3794_v16 = vld [vmem:[#allocation14 + $0x4c] ss:$12 sps:$4 sm:$0xff]  }
 0x1c7   :  { %2541 = vmatpush3.bf16.msra.mxu1 %v2799_v52  ;;  %v3797_v17 = vld [vmem:[#allocation14 + $0x50] ss:$12 sps:$4 sm:$0xff]   ;;  %v3801_v18 = vld [vmem:[#allocation14 + $0x48] ss:$12 sps:$4 sm:$0xff]   ;;  %v3811_v24 = vld [vmem:[#allocation14 + $0x60] ss:$12 sps:$4 sm:$0xff]  }
 0x1c8   :  { %2542 = vmatprep.subr.bf16.mxu1 %v3351_v1  ;;  %v3804_v19 = vld [vmem:[#allocation14 + $0x64] ss:$12 sps:$4 sm:$0xff]   ;;  %v3807_v20 = vld [vmem:[#allocation14 + $0x68] ss:$12 sps:$4 sm:$0xff]   ;;  %v3817_v26 = vld [vmem:[#allocation14 + $0x80] ss:$12 sps:$4 sm:$0xff]  }
 0x1c9   :  { %968 = vmatpush1.bf16.msra.mxu0 %v2784_v45  ;;  %v3814_v25 = vld [vmem:[#allocation14 + $0x7c] ss:$12 sps:$4 sm:$0xff]   ;;  %v3821_v28 = vld [vmem:[#allocation14 + $0x78] ss:$12 sps:$4 sm:$0xff]   ;;  %v3824_v29 = vld [vmem:[#allocation14 + $0x94] ss:$12 sps:$4 sm:$0xff]  }
 0x1ca   :  { %969 = vmatprep.subr.bf16.mxu0 %v2785_v47  ;;  %v3827_v32 = vld [vmem:[#allocation14 + $0x98] ss:$12 sps:$4 sm:$0xff]   ;;  %v3831_v34 = vld [vmem:[#allocation14 + $0x90] ss:$12 sps:$4 sm:$0xff]   ;;  %v3841_v37 = vld [vmem:[#allocation14 + $0xa8] ss:$12 sps:$4 sm:$0xff]  }
 0x1cb   :  { %2543 = vmatpush3.bf16.msra.mxu1 %v2800_v54  ;;  %v3834_v35 = vld [vmem:[#allocation14 + $0xac] ss:$12 sps:$4 sm:$0xff]   ;;  %v3837_v36 = vld [vmem:[#allocation14 + $0xb0] ss:$12 sps:$4 sm:$0xff]   ;;  %s1068_s4 = scalar_select %p1067_p2, 1, 0 }
 0x1cc   :  { %2544 = vmatprep.subr.bf16.mxu1 %v3351_v1  ;;  %v816_v38 = vld [vmem:[#allocation13] sm:$0x7]  ;;  %p1348_p3 = scmp.gt.s32.totalorder %s4183_s0, 1  ;;  %p1473_p4 = scmp.gt.s32.totalorder %s4183_s0, 2 }
 0x1cd   :  { %970 = vmatpush1.bf16.msra.mxu0 %v2787_v49  ;;  %v821_v39 = vrot.slane %v816_v38, %v3547_v3  ;;  %v825_v40 = vrot.slane %v816_v38, %v3549_v4  ;;  %p1597_p5 = scmp.gt.s32.totalorder %s4183_s0, 3  ;;  %p1723_p6 = scmp.gt.s32.totalorder %s4183_s0, 4 }
 0x1ce   :  { %971 = vmatprep.subr.bf16.mxu0 %v2788_v50  ;;  %s1349_s8 = scalar_select %p1348_p3, 1, 0 }
 0x1cf   :  { %2545 = vmatpush3.bf16.msra.mxu1 %v2801_v57  ;;  %s1474_s15 = scalar_select %p1473_p4, 1, 0 }
 0x1d0   :  { %2546 = vmatprep.subr.bf16.mxu1 %v3351_v1  ;;  %s1598_s21 = scalar_select %p1597_p5, 1, 0 }
 0x1d1   :  { %972 = vmatpush1.bf16.msra.mxu0 %v2790_v51  ;;  %s1724_s24 = scalar_select %p1723_p6, 1, 0 }
 0x1d2   :  { %973 = vmatprep.subr.bf16.mxu0 %v2791_v53  ;;  %p1847_p7 = scmp.gt.s32.totalorder %s4183_s0, 5  ;;  %p1973_p8 = scmp.gt.s32.totalorder %s4183_s0, 6 }
 0x1d3   :  { %2547 = vmatpush3.bf16.msra.mxu1 %v2802_v60  ;;  %p2097_p9 = scmp.gt.s32.totalorder %s4183_s0, 7 }
 0x1d4   :  { %2548 = vmatprep.subr.bf16.mxu1 %v3351_v1  ;;  %s1848_s6 = scalar_select %p1847_p7, 1, 0 }
 0x1d5   :  { %974 = vmatpush1.bf16.msra.mxu0 %v2793_v55  ;;  %s1974_s5 = scalar_select %p1973_p8, 1, 0 }
 0x1d6   :  { %975 = vmatprep.subr.bf16.mxu0 %v2794_v56  ;;  %s2098_s18 = scalar_select %p2097_p9, 1, 0 }
 0x1d7   :  { %2549 = vmatpush3.bf16.msra.mxu1 %v2803_v62 }
 0x1d8   :  { %2550 = vmatprep.subr.bf16.mxu1 %v3351_v1 }
 0x1d9   :  { %976 = vmatpush1.bf16.msra.mxu0 %v2797_v58 }
 0x1da   :  { %1233 = vmatprep.subr.bf16.mxu0 %v3767_v2 }
 0x1db   :  { %2551 = vmatpush3.bf16.msra.mxu1 %v2804_v63  ;;  %v1069_v63 = vstv %s1068_s4 }
 0x1dc   :  { %994 = vmatmul.mubr.bf16.vlgmr.msra.gmra.mrb[4].mxu0 %v783_v61  ;;  %2556 = vmatprep.subr.bf16.mxu1 %v3351_v1  ;;  %vm1070_vm8 = vcmp.eq.s32.totalorder %v1069_v63, 1 }
 0x1dd   :  { %1265 = vmatprep.mubr.bf16.mxu0 %v3353_v8  ;;  %1234 = vmatpush1.bf16.msra.mxu0 %v3769_v7 }
 0x1de   :  { %2553 = vmatmul.mubr.bf16.vlgmr.msra.gmra.mrb[4].mxu1 %v783_v61  ;;  %1235 = vmatprep.subr.bf16.mxu0 %v3773_v10 }
 0x1df   :  { %2572 = vmatprep.mubr.msk.bf16.mxu1 %vm3352_vm1, %v3351_v1  ;;  %2557 = vmatpush3.bf16.msra.mxu1 %v3771_v9 }
 0x1e0   :  { %2558 = vmatprep.subr.bf16.mxu1 %v3351_v1 }
 0x1e1   :  { %1236 = vmatpush1.bf16.msra.mxu0 %v3781_v12 }
 0x1e2   :  { %1237 = vmatprep.subr.bf16.mxu0 %v3784_v13 }
 0x1e3   :  { %2559 = vmatpush3.bf16.msra.mxu1 %v3777_v11 }
 0x1e4   :  { %2560 = vmatprep.subr.bf16.mxu1 %v3351_v1 }
 0x1e5   :  { %1238 = vmatpush1.bf16.msra.mxu0 %v3791_v15 }
 0x1e6   :  { %1239 = vmatprep.subr.bf16.mxu0 %v3794_v16 }
 0x1e7   :  { %2561 = vmatpush3.bf16.msra.mxu1 %v3787_v14 }
 0x1e8   :  { %2562 = vmatprep.subr.bf16.mxu1 %v3351_v1 }
 0x1e9   :  { %1240 = vmatpush1.bf16.msra.mxu0 %v3801_v18 }
 0x1ea   :  { %1241 = vmatprep.subr.bf16.mxu0 %v3804_v19 }
 0x1eb   :  { %2563 = vmatpush3.bf16.msra.mxu1 %v3797_v17 }
 0x1ec   :  { %2564 = vmatprep.subr.bf16.mxu1 %v3351_v1 }
 0x1ed   :  { %1242 = vmatpush1.bf16.msra.mxu0 %v3811_v24 }
 0x1ee   :  { %1243 = vmatprep.subr.bf16.mxu0 %v3814_v25 }
 0x1ef   :  { %2565 = vmatpush3.bf16.msra.mxu1 %v3807_v20 }
 0x1f0   :  { %2566 = vmatprep.subr.bf16.mxu1 %v3351_v1 }
 0x1f1   :  { %1244 = vmatpush1.bf16.msra.mxu0 %v3821_v28 }
 0x1f2   :  { %1245 = vmatprep.subr.bf16.mxu0 %v3824_v29 }
 0x1f3   :  { %2567 = vmatpush3.bf16.msra.mxu1 %v3817_v26 }
 0x1f4   :  { %2568 = vmatprep.subr.bf16.mxu1 %v3351_v1 }
 0x1f5   :  { %1246 = vmatpush1.bf16.msra.mxu0 %v3831_v34 }
 0x1f6   :  { %1247 = vmatprep.subr.bf16.mxu0 %v3834_v35 }
 0x1f7   :  { %2569 = vmatpush3.bf16.msra.mxu1 %v3827_v32 }
 0x1f8   :  { %2570 = vmatprep.subr.bf16.mxu1 %v3351_v1 }
 0x1f9   :  { %1248 = vmatpush1.bf16.msra.mxu0 %v3841_v37 }
 0x1fa   :  { %1358 = vmatprep.subr.bf16.mxu0 %v3767_v2 }
 0x1fb   :  { %2571 = vmatpush3.bf16.msra.mxu1 %v3837_v36 }
 0x1fc   :  { %2576 = vmatprep.subr.bf16.mxu1 %v3351_v1 }
 0x2af   :  { %v995_v41 = vpop.f32.mrb[4].mxu0 }
 0x2b0   :  { %v996_v42 = vadd.f32 %v995_v41, %v821_v39  ;;  %v997_v43 = vpop.f32.mrb[5].mxu0 }
 0x2b1   :  { %v998_v44 = vadd.f32 %v997_v43, %v825_v40  ;;  %v999_v45 = vpop.f32.mrb[6].mxu0  ;;  %v1036_v4 = vpop.f32.mrb[4].mxu1 }
 0x2b2   :  { %v3851_v46 = vadd.f32 %v996_v42, %v3621_v21  ;;  %v1000_v47 = vpop.f32.mrb[7].mxu0  ;;  %v2554_v51 = vpop.f32.mrb[5].mxu1 }
 0x2b3   :  { %v3854_v48 = vadd.f32 %v998_v44, %v3623_v22  ;;  %v1039_v52 = vpop.f32.mrb[6].mxu1  ;;  %v829_v22 = vrot.slane %v816_v38, %v3551_v5 }
 0x2b4   :  { %v1045_v49 = vadd.f32 %v3851_v46, %v3748_v31  ;;  %v2555_v54 = vpop.f32.mrb[7].mxu1  ;;  %v1059_v31 = vadd.f32 %v3746_v30, %v3553_v6 }
 0x2b5   :  { %v1052_v3 = vadd.f32 %v3854_v48, %v3750_v33  ;;  %v1037_v57 = vadd.f32 %v1036_v4, %v829_v22 }
 0x2b6   :  { %v2377_v50 = vmul.f32 -1.442695, %v1045_v49 }
 0x2b7   :  { %v2378_v53 = vmul.f32 -1.442695, %v1052_v3  ;;  %v3864_v33 = vadd.f32 %v1037_v57, %v3625_v23 }
 0x2b8   :  { %2845 = vpow2.f32 %v2377_v50 }
 0x2b9   :  { %2847 = vpow2.f32 %v2378_v53 }
 0x2c2   :  { %v2846_v21 = vpop.eup %2845 }
 0x2c3   :  { %v1049_v55 = vadd.f32 1.0, %v2846_v21  ;;  %v2848_v56 = vpop.eup %2847 }
 0x2c4   :  { %v1056_v58 = vadd.f32 1.0, %v2848_v56 }
 0x2c5   :  { %2849 = vrcp.f32 %v1049_v55 }
 0x2c6   :  { %2851 = vrcp.f32 %v1056_v58 }
 0x2cf   :  { %v2850_v59 = vpop.eup %2849 }
 0x2d0   :  { %v1060_v60 = vmul.f32 %v2850_v59, %v1059_v31  ;;  %v2852_v5 = vpop.eup %2851 }
 0x2d1   :  { %v1063_v62 = vsub.f32 1.0, %v2852_v5  ;;  %v1065_v30 = vmul.f32 %v2852_v5, %v3632_v27 }
 0x2d2   :  { %v1061_v61 = vadd.f32 %v1060_v60, %v3864_v33 }
 0x2d4   :  { %2853 = vtanh.f32 %v1061_v61 }
 0x2de   :  { %v2854_v38 = vpop.eup %2853 }
 0x2df   :  { %v1064_v39 = vmul.f32 %v2854_v38, %v1063_v62  ;;  %v1350_v38 = vstv %s1349_s8 }
 0x2e0   :  { %vm1351_vm9 = vcmp.eq.s32.totalorder %v1350_v38, 1 }
 0x2e1   :  { %v1066_v23 = vadd.f32 %v1065_v30, %v1064_v39 }
 0x2e3   :  { %v3872_v40 = vsel %vm1070_vm8, %v1066_v23, %v3632_v27 }
 0x2e4   :  { %v1072_v41 = vpack.c.bf16 %v3872_v40, %v3872_v40  ;;  %v1344_v59 = vrot.slane %v3872_v40, 7 }
 0x2e6   :  { %1266 = vmatmul.mubr.bf16.vlgmr.msra.gmra.mrb[8].mxu0 %v1072_v41  ;;  %2573 = vmatmul.mubr.bf16.vlgmr.msra.gmra.mrb[8].mxu1 %v1072_v41 }
 0x2e7   :  { %1359 = vmatpush1.bf16.msra.mxu0 %v3769_v7  ;;  %2577 = vmatpush3.bf16.msra.mxu1 %v3771_v9 }
 0x2e8   :  { %1360 = vmatprep.subr.bf16.mxu0 %v3773_v10  ;;  %2578 = vmatprep.subr.bf16.mxu1 %v3351_v1 }
 0x2e9   :  { %1390 = vmatprep.mubr.bf16.mxu0 %v3353_v8  ;;  %2592 = vmatprep.mubr.msk.bf16.mxu1 %vm3352_vm1, %v3351_v1 }
 0x2eb   :  { %1361 = vmatpush1.bf16.msra.mxu0 %v3781_v12  ;;  %2579 = vmatpush3.bf16.msra.mxu1 %v3777_v11 }
 0x2ec   :  { %1362 = vmatprep.subr.bf16.mxu0 %v3784_v13  ;;  %2580 = vmatprep.subr.bf16.mxu1 %v3351_v1 }
 0x2ef   :  { %1363 = vmatpush1.bf16.msra.mxu0 %v3791_v15  ;;  %2581 = vmatpush3.bf16.msra.mxu1 %v3787_v14 }
 0x2f0   :  { %1364 = vmatprep.subr.bf16.mxu0 %v3794_v16  ;;  %2582 = vmatprep.subr.bf16.mxu1 %v3351_v1 }
 0x2f3   :  { %1365 = vmatpush1.bf16.msra.mxu0 %v3801_v18  ;;  %2583 = vmatpush3.bf16.msra.mxu1 %v3797_v17 }
 0x2f4   :  { %1366 = vmatprep.subr.bf16.mxu0 %v3804_v19  ;;  %2584 = vmatprep.subr.bf16.mxu1 %v3351_v1 }
 0x2f7   :  { %1367 = vmatpush1.bf16.msra.mxu0 %v3811_v24  ;;  %2585 = vmatpush3.bf16.msra.mxu1 %v3807_v20 }
 0x2f8   :  { %1368 = vmatprep.subr.bf16.mxu0 %v3814_v25  ;;  %2586 = vmatprep.subr.bf16.mxu1 %v3351_v1 }
 0x2fb   :  { %1369 = vmatpush1.bf16.msra.mxu0 %v3821_v28  ;;  %2587 = vmatpush3.bf16.msra.mxu1 %v3817_v26 }
 0x2fc   :  { %1370 = vmatprep.subr.bf16.mxu0 %v3824_v29  ;;  %2588 = vmatprep.subr.bf16.mxu1 %v3351_v1 }
 0x2ff   :  { %1371 = vmatpush1.bf16.msra.mxu0 %v3831_v34  ;;  %2589 = vmatpush3.bf16.msra.mxu1 %v3827_v32 }
 0x300   :  { %1372 = vmatprep.subr.bf16.mxu0 %v3834_v35  ;;  %2590 = vmatprep.subr.bf16.mxu1 %v3351_v1 }
 0x303   :  { %1373 = vmatpush1.bf16.msra.mxu0 %v3841_v37  ;;  %2591 = vmatpush3.bf16.msra.mxu1 %v3837_v36 }
 0x304   :  { %1482 = vmatprep.subr.bf16.mxu0 %v3767_v2  ;;  %2596 = vmatprep.subr.bf16.mxu1 %v3351_v1 }
 0x3b9   :  { %v1267_v27 = vpop.f32.mrb[8].mxu0  ;;  %v1308_v42 = vpop.f32.mrb[8].mxu1 }
 0x3ba   :  { %v1315_v43 = vrot.slane %v1267_v27, 7  ;;  %v1269_v44 = vpop.f32.mrb[9].mxu0  ;;  %v2574_v45 = vpop.f32.mrb[9].mxu1  ;;  %v1334_v57 = vadd.f32 %v1308_v42, %v3553_v6 }
 0x3bb   :  { %v1325_v47 = vrot.slane %v1269_v44, 7  ;;  %v1271_v49 = vpop.f32.mrb[10].mxu0  ;;  %v1311_v50 = vpop.f32.mrb[10].mxu1 }
 0x3bc   :  { %v1317_v3 = vadd.f32 %v1315_v43, %v3851_v46  ;;  %v1272_v4 = vpop.f32.mrb[11].mxu0  ;;  %v2575_v51 = vpop.f32.mrb[11].mxu1  ;;  %v1336_v58 = vrot.slane %v1334_v57, 7 }
 0x3bd   :  { %v1327_v52 = vadd.f32 %v1325_v47, %v3854_v48 }
 0x3be   :  { %v2403_v53 = vmul.f32 -1.442695, %v1317_v3 }
 0x3bf   :  { %v2404_v54 = vmul.f32 -1.442695, %v1327_v52 }
 0x3c0   :  { %2855 = vpow2.f32 %v2403_v53 }
 0x3c1   :  { %2857 = vpow2.f32 %v2404_v54 }
 0x3ca   :  { %v2856_v21 = vpop.eup %2855 }
 0x3cb   :  { %v2858_v55 = vpop.eup %2857  ;;  %v1321_v22 = vadd.f32 1.0, %v2856_v21 }
 0x3cc   :  { %v1331_v56 = vadd.f32 1.0, %v2858_v55 }
 0x3cd   :  { %2859 = vrcp.f32 %v1321_v22 }
 0x3ce   :  { %2861 = vrcp.f32 %v1331_v56 }
 0x3d7   :  { %v2860_v31 = vpop.eup %2859 }
 0x3d8   :  { %v2862_v60 = vpop.eup %2861  ;;  %v1338_v61 = vmul.f32 %v2860_v31, %v1336_v58 }
 0x3d9   :  { %v1346_v5 = vmul.f32 %v2862_v60, %v1344_v59  ;;  %v1341_v63 = vsub.f32 1.0, %v2862_v60 }
 0x3da   :  { %v1339_v62 = vadd.f32 %v1338_v61, %v3864_v33 }
 0x3dc   :  { %2863 = vtanh.f32 %v1339_v62 }
 0x3e6   :  { %v2864_v39 = vpop.eup %2863 }
 0x3e7   :  { %v1342_v30 = vmul.f32 %v2864_v39, %v1341_v63  ;;  %v1475_v39 = vstv %s1474_s15 }
 0x3e8   :  { %vm1476_vm10 = vcmp.eq.s32.totalorder %v1475_v39, 1 }
 0x3e9   :  { %v1347_v23 = vadd.f32 %v1346_v5, %v1342_v30 }
 0x3eb   :  { %v3919_v41 = vsel %vm1351_vm9, %v1347_v23, %v1344_v59 }
 0x3ec   :  { %v1353_v40 = vpack.c.bf16 %v3919_v41, %v3919_v41  ;;  %v1469_v60 = vrot.slane %v3919_v41, 7 }
 0x3ee   :  { %v1355_v27 = vshrl.u32 %v1353_v40, 16 }
 0x3f0   :  { %1391 = vmatmul.mubr.bf16.vlgmr.msra.gmra.mrb[12].mxu0 %v1355_v27  ;;  %2593 = vmatmul.mubr.bf16.vlgmr.msra.gmra.mrb[12].mxu1 %v1355_v27 }
 0x3f1   :  { %1483 = vmatpush1.bf16.msra.mxu0 %v3769_v7  ;;  %2597 = vmatpush3.bf16.msra.mxu1 %v3771_v9 }
 0x3f2   :  { %1484 = vmatprep.subr.bf16.mxu0 %v3773_v10  ;;  %2598 = vmatprep.subr.bf16.mxu1 %v3351_v1 }
 0x3f3   :  { %1514 = vmatprep.mubr.bf16.mxu0 %v3353_v8  ;;  %2612 = vmatprep.mubr.msk.bf16.mxu1 %vm3352_vm1, %v3351_v1 }
 0x3f5   :  { %1485 = vmatpush1.bf16.msra.mxu0 %v3781_v12  ;;  %2599 = vmatpush3.bf16.msra.mxu1 %v3777_v11 }
 0x3f6   :  { %1486 = vmatprep.subr.bf16.mxu0 %v3784_v13  ;;  %2600 = vmatprep.subr.bf16.mxu1 %v3351_v1 }
 0x3f9   :  { %1487 = vmatpush1.bf16.msra.mxu0 %v3791_v15  ;;  %2601 = vmatpush3.bf16.msra.mxu1 %v3787_v14 }
 0x3fa   :  { %1488 = vmatprep.subr.bf16.mxu0 %v3794_v16  ;;  %2602 = vmatprep.subr.bf16.mxu1 %v3351_v1 }
 0x3fd   :  { %1489 = vmatpush1.bf16.msra.mxu0 %v3801_v18  ;;  %2603 = vmatpush3.bf16.msra.mxu1 %v3797_v17 }
 0x3fe   :  { %1490 = vmatprep.subr.bf16.mxu0 %v3804_v19  ;;  %2604 = vmatprep.subr.bf16.mxu1 %v3351_v1 }
 0x401   :  { %1491 = vmatpush1.bf16.msra.mxu0 %v3811_v24  ;;  %2605 = vmatpush3.bf16.msra.mxu1 %v3807_v20 }
 0x402   :  { %1492 = vmatprep.subr.bf16.mxu0 %v3814_v25  ;;  %2606 = vmatprep.subr.bf16.mxu1 %v3351_v1 }
 0x405   :  { %1493 = vmatpush1.bf16.msra.mxu0 %v3821_v28  ;;  %2607 = vmatpush3.bf16.msra.mxu1 %v3817_v26 }
 0x406   :  { %1494 = vmatprep.subr.bf16.mxu0 %v3824_v29  ;;  %2608 = vmatprep.subr.bf16.mxu1 %v3351_v1 }
 0x409   :  { %1495 = vmatpush1.bf16.msra.mxu0 %v3831_v34  ;;  %2609 = vmatpush3.bf16.msra.mxu1 %v3827_v32 }
 0x40a   :  { %1496 = vmatprep.subr.bf16.mxu0 %v3834_v35  ;;  %2610 = vmatprep.subr.bf16.mxu1 %v3351_v1 }
 0x40d   :  { %1497 = vmatpush1.bf16.msra.mxu0 %v3841_v37  ;;  %2611 = vmatpush3.bf16.msra.mxu1 %v3837_v36 }
 0x40e   :  { %1608 = vmatprep.subr.bf16.mxu0 %v3767_v2  ;;  %2616 = vmatprep.subr.bf16.mxu1 %v3351_v1 }
 0x4c3   :  { %v1392_v42 = vpop.f32.mrb[12].mxu0  ;;  %v1433_v43 = vpop.f32.mrb[12].mxu1 }
 0x4c4   :  { %v1440_v44 = vrot.slane %v1392_v42, 6  ;;  %v1394_v45 = vpop.f32.mrb[13].mxu0  ;;  %v2594_v47 = vpop.f32.mrb[13].mxu1  ;;  %v1459_v58 = vadd.f32 %v1433_v43, %v3553_v6 }
 0x4c5   :  { %v1450_v49 = vrot.slane %v1394_v45, 6  ;;  %v1396_v50 = vpop.f32.mrb[14].mxu0  ;;  %v1436_v3 = vpop.f32.mrb[14].mxu1 }
 0x4c6   :  { %v1442_v4 = vadd.f32 %v1440_v44, %v3851_v46  ;;  %v1397_v51 = vpop.f32.mrb[15].mxu0  ;;  %v2595_v52 = vpop.f32.mrb[15].mxu1  ;;  %v1461_v31 = vrot.slane %v1459_v58, 6 }
 0x4c7   :  { %v1452_v53 = vadd.f32 %v1450_v49, %v3854_v48 }
 0x4c8   :  { %v2405_v54 = vmul.f32 -1.442695, %v1442_v4 }
 0x4c9   :  { %v2406_v21 = vmul.f32 -1.442695, %v1452_v53 }
 0x4ca   :  { %2865 = vpow2.f32 %v2405_v54 }
 0x4cb   :  { %2867 = vpow2.f32 %v2406_v21 }
 0x4d4   :  { %v2866_v55 = vpop.eup %2865 }
 0x4d5   :  { %v2868_v22 = vpop.eup %2867  ;;  %v1446_v56 = vadd.f32 1.0, %v2866_v55 }
 0x4d6   :  { %v1456_v57 = vadd.f32 1.0, %v2868_v22 }
 0x4d7   :  { %2869 = vrcp.f32 %v1446_v56 }
 0x4d8   :  { %2871 = vrcp.f32 %v1456_v57 }
 0x4e1   :  { %v2870_v59 = vpop.eup %2869 }
 0x4e2   :  { %v2872_v61 = vpop.eup %2871  ;;  %v1463_v5 = vmul.f32 %v2870_v59, %v1461_v31 }
 0x4e3   :  { %v1471_v62 = vmul.f32 %v2872_v61, %v1469_v60  ;;  %v1466_v38 = vsub.f32 1.0, %v2872_v61 }
 0x4e4   :  { %v1464_v63 = vadd.f32 %v1463_v5, %v3864_v33 }
 0x4e6   :  { %2873 = vtanh.f32 %v1464_v63 }
 0x4f0   :  { %v2874_v30 = vpop.eup %2873 }
 0x4f1   :  { %v1467_v23 = vmul.f32 %v2874_v30, %v1466_v38  ;;  %v1599_v30 = vstv %s1598_s21 }
 0x4f2   :  { %vm1600_vm11 = vcmp.eq.s32.totalorder %v1599_v30, 1 }
 0x4f3   :  { %v1472_v40 = vadd.f32 %v1471_v62, %v1467_v23 }
 0x4f5   :  { %v3966_v27 = vsel %vm1476_vm10, %v1472_v40, %v1469_v60 }
 0x4f6   :  { %v1478_v41 = vpack.c.bf16 %v3966_v27, %v3966_v27  ;;  %v1593_v61 = vrot.slane %v3966_v27, 7 }
 0x4f8   :  { %v1480_v42 = vrot.slane %v1478_v41, 1 }
 0x4fa   :  { %1515 = vmatmul.mubr.bf16.vlgmr.msra.gmra.mrb[16].mxu0 %v1480_v42  ;;  %2613 = vmatmul.mubr.bf16.vlgmr.msra.gmra.mrb[16].mxu1 %v1480_v42 }
 0x4fb   :  { %1609 = vmatpush1.bf16.msra.mxu0 %v3769_v7  ;;  %2617 = vmatpush3.bf16.msra.mxu1 %v3771_v9 }
 0x4fc   :  { %1610 = vmatprep.subr.bf16.mxu0 %v3773_v10  ;;  %2618 = vmatprep.subr.bf16.mxu1 %v3351_v1 }
 0x4fd   :  { %1640 = vmatprep.mubr.bf16.mxu0 %v3353_v8  ;;  %2632 = vmatprep.mubr.msk.bf16.mxu1 %vm3352_vm1, %v3351_v1 }
 0x4ff   :  { %1611 = vmatpush1.bf16.msra.mxu0 %v3781_v12  ;;  %2619 = vmatpush3.bf16.msra.mxu1 %v3777_v11 }
 0x500   :  { %1612 = vmatprep.subr.bf16.mxu0 %v3784_v13  ;;  %2620 = vmatprep.subr.bf16.mxu1 %v3351_v1 }
 0x503   :  { %1613 = vmatpush1.bf16.msra.mxu0 %v3791_v15  ;;  %2621 = vmatpush3.bf16.msra.mxu1 %v3787_v14 }
 0x504   :  { %1614 = vmatprep.subr.bf16.mxu0 %v3794_v16  ;;  %2622 = vmatprep.subr.bf16.mxu1 %v3351_v1 }
 0x507   :  { %1615 = vmatpush1.bf16.msra.mxu0 %v3801_v18  ;;  %2623 = vmatpush3.bf16.msra.mxu1 %v3797_v17 }
 0x508   :  { %1616 = vmatprep.subr.bf16.mxu0 %v3804_v19  ;;  %2624 = vmatprep.subr.bf16.mxu1 %v3351_v1 }
 0x50b   :  { %1617 = vmatpush1.bf16.msra.mxu0 %v3811_v24  ;;  %2625 = vmatpush3.bf16.msra.mxu1 %v3807_v20 }
 0x50c   :  { %1618 = vmatprep.subr.bf16.mxu0 %v3814_v25  ;;  %2626 = vmatprep.subr.bf16.mxu1 %v3351_v1 }
 0x50f   :  { %1619 = vmatpush1.bf16.msra.mxu0 %v3821_v28  ;;  %2627 = vmatpush3.bf16.msra.mxu1 %v3817_v26 }
 0x510   :  { %1620 = vmatprep.subr.bf16.mxu0 %v3824_v29  ;;  %2628 = vmatprep.subr.bf16.mxu1 %v3351_v1 }
 0x513   :  { %1621 = vmatpush1.bf16.msra.mxu0 %v3831_v34  ;;  %2629 = vmatpush3.bf16.msra.mxu1 %v3827_v32 }
 0x514   :  { %1622 = vmatprep.subr.bf16.mxu0 %v3834_v35  ;;  %2630 = vmatprep.subr.bf16.mxu1 %v3351_v1 }
 0x517   :  { %1623 = vmatpush1.bf16.msra.mxu0 %v3841_v37  ;;  %2631 = vmatpush3.bf16.msra.mxu1 %v3837_v36 }
 0x518   :  { %1732 = vmatprep.subr.bf16.mxu0 %v3767_v2  ;;  %2636 = vmatprep.subr.bf16.mxu1 %v3351_v1 }
 0x5cd   :  { %v1516_v43 = vpop.f32.mrb[16].mxu0  ;;  %v1557_v44 = vpop.f32.mrb[16].mxu1 }
 0x5ce   :  { %v1564_v45 = vrot.slane %v1516_v43, 5  ;;  %v1518_v47 = vpop.f32.mrb[17].mxu0  ;;  %v2614_v49 = vpop.f32.mrb[17].mxu1  ;;  %v1583_v31 = vadd.f32 %v1557_v44, %v3553_v6 }
 0x5cf   :  { %v1574_v50 = vrot.slane %v1518_v47, 5  ;;  %v1520_v3 = vpop.f32.mrb[18].mxu0  ;;  %v1560_v4 = vpop.f32.mrb[18].mxu1 }
 0x5d0   :  { %v1566_v51 = vadd.f32 %v1564_v45, %v3851_v46  ;;  %v1521_v52 = vpop.f32.mrb[19].mxu0  ;;  %v2615_v53 = vpop.f32.mrb[19].mxu1  ;;  %v1585_v59 = vrot.slane %v1583_v31, 5 }
 0x5d1   :  { %v1576_v54 = vadd.f32 %v1574_v50, %v3854_v48 }
 0x5d2   :  { %v2407_v21 = vmul.f32 -1.442695, %v1566_v51 }
 0x5d3   :  { %v2408_v55 = vmul.f32 -1.442695, %v1576_v54 }
 0x5d4   :  { %2875 = vpow2.f32 %v2407_v21 }
 0x5d5   :  { %2877 = vpow2.f32 %v2408_v55 }
 0x5de   :  { %v2876_v22 = vpop.eup %2875 }
 0x5df   :  { %v2878_v56 = vpop.eup %2877  ;;  %v1570_v57 = vadd.f32 1.0, %v2876_v22 }
 0x5e0   :  { %v1580_v58 = vadd.f32 1.0, %v2878_v56 }
 0x5e1   :  { %2879 = vrcp.f32 %v1570_v57 }
 0x5e2   :  { %2881 = vrcp.f32 %v1580_v58 }
 0x5eb   :  { %v2880_v60 = vpop.eup %2879 }
 0x5ec   :  { %v2882_v5 = vpop.eup %2881  ;;  %v1587_v62 = vmul.f32 %v2880_v60, %v1585_v59 }
 0x5ed   :  { %v1595_v63 = vmul.f32 %v2882_v5, %v1593_v61  ;;  %v1590_v39 = vsub.f32 1.0, %v2882_v5 }
 0x5ee   :  { %v1588_v38 = vadd.f32 %v1587_v62, %v3864_v33 }
 0x5f0   :  { %2883 = vtanh.f32 %v1588_v38 }
 0x5fa   :  { %v2884_v23 = vpop.eup %2883 }
 0x5fb   :  { %v1591_v40 = vmul.f32 %v2884_v23, %v1590_v39 }
 0x5fd   :  { %v1596_v41 = vadd.f32 %v1595_v63, %v1591_v40  ;;  %v1725_v40 = vstv %s1724_s24 }
 0x5fe   :  { %vm1726_vm12 = vcmp.eq.s32.totalorder %v1725_v40, 1  ;;  %v1849_v40 = vstv %s1848_s6 }
 0x5ff   :  { %v4013_v42 = vsel %vm1600_vm11, %v1596_v41, %v1593_v61  ;;  %vm1850_vm13 = vcmp.eq.s32.totalorder %v1849_v40, 1 }
 0x600   :  { %v1602_v27 = vpack.c.bf16 %v4013_v42, %v4013_v42  ;;  %v1719_v62 = vrot.slane %v4013_v42, 7 }
 0x602   :  { %v1604_v43 = vshrl.u32 %v1602_v27, 16 }
 0x604   :  { %v1606_v44 = vrot.slane %v1604_v43, 1 }
 0x606   :  { %1641 = vmatmul.mubr.bf16.vlgmr.msra.gmra.mrb[20].mxu0 %v1606_v44  ;;  %2633 = vmatmul.mubr.bf16.vlgmr.msra.gmra.mrb[20].mxu1 %v1606_v44 }
 0x607   :  { %1733 = vmatpush1.bf16.msra.mxu0 %v3769_v7  ;;  %2637 = vmatpush3.bf16.msra.mxu1 %v3771_v9 }
 0x608   :  { %1734 = vmatprep.subr.bf16.mxu0 %v3773_v10  ;;  %2638 = vmatprep.subr.bf16.mxu1 %v3351_v1 }
 0x609   :  { %1764 = vmatprep.mubr.bf16.mxu0 %v3353_v8  ;;  %2652 = vmatprep.mubr.msk.bf16.mxu1 %vm3352_vm1, %v3351_v1 }
 0x60b   :  { %1735 = vmatpush1.bf16.msra.mxu0 %v3781_v12  ;;  %2639 = vmatpush3.bf16.msra.mxu1 %v3777_v11 }
 0x60c   :  { %1736 = vmatprep.subr.bf16.mxu0 %v3784_v13  ;;  %2640 = vmatprep.subr.bf16.mxu1 %v3351_v1 }
 0x60f   :  { %1737 = vmatpush1.bf16.msra.mxu0 %v3791_v15  ;;  %2641 = vmatpush3.bf16.msra.mxu1 %v3787_v14 }
 0x610   :  { %1738 = vmatprep.subr.bf16.mxu0 %v3794_v16  ;;  %2642 = vmatprep.subr.bf16.mxu1 %v3351_v1 }
 0x613   :  { %1739 = vmatpush1.bf16.msra.mxu0 %v3801_v18  ;;  %2643 = vmatpush3.bf16.msra.mxu1 %v3797_v17 }
 0x614   :  { %1740 = vmatprep.subr.bf16.mxu0 %v3804_v19  ;;  %2644 = vmatprep.subr.bf16.mxu1 %v3351_v1 }
 0x617   :  { %1741 = vmatpush1.bf16.msra.mxu0 %v3811_v24  ;;  %2645 = vmatpush3.bf16.msra.mxu1 %v3807_v20 }
 0x618   :  { %1742 = vmatprep.subr.bf16.mxu0 %v3814_v25  ;;  %2646 = vmatprep.subr.bf16.mxu1 %v3351_v1 }
 0x61b   :  { %1743 = vmatpush1.bf16.msra.mxu0 %v3821_v28  ;;  %2647 = vmatpush3.bf16.msra.mxu1 %v3817_v26 }
 0x61c   :  { %1744 = vmatprep.subr.bf16.mxu0 %v3824_v29  ;;  %2648 = vmatprep.subr.bf16.mxu1 %v3351_v1 }
 0x61f   :  { %1745 = vmatpush1.bf16.msra.mxu0 %v3831_v34  ;;  %2649 = vmatpush3.bf16.msra.mxu1 %v3827_v32 }
 0x620   :  { %1746 = vmatprep.subr.bf16.mxu0 %v3834_v35  ;;  %2650 = vmatprep.subr.bf16.mxu1 %v3351_v1 }
 0x623   :  { %1747 = vmatpush1.bf16.msra.mxu0 %v3841_v37  ;;  %2651 = vmatpush3.bf16.msra.mxu1 %v3837_v36 }
 0x624   :  { %1858 = vmatprep.subr.bf16.mxu0 %v3767_v2  ;;  %2656 = vmatprep.subr.bf16.mxu1 %v3351_v1 }
 0x6d9   :  { %v1642_v45 = vpop.f32.mrb[20].mxu0  ;;  %v1683_v47 = vpop.f32.mrb[20].mxu1 }
 0x6da   :  { %v1690_v49 = vrot.slane %v1642_v45, 4  ;;  %v1644_v50 = vpop.f32.mrb[21].mxu0  ;;  %v2634_v3 = vpop.f32.mrb[21].mxu1  ;;  %v1709_v60 = vadd.f32 %v1683_v47, %v3553_v6 }
 0x6db   :  { %v1700_v4 = vrot.slane %v1644_v50, 4  ;;  %v1646_v51 = vpop.f32.mrb[22].mxu0  ;;  %v1686_v52 = vpop.f32.mrb[22].mxu1 }
 0x6dc   :  { %v1692_v53 = vadd.f32 %v1690_v49, %v3851_v46  ;;  %v1647_v54 = vpop.f32.mrb[23].mxu0  ;;  %v2635_v21 = vpop.f32.mrb[23].mxu1  ;;  %v1711_v61 = vrot.slane %v1709_v60, 4 }
 0x6dd   :  { %v1702_v55 = vadd.f32 %v1700_v4, %v3854_v48 }
 0x6de   :  { %v2409_v22 = vmul.f32 -1.442695, %v1692_v53 }
 0x6df   :  { %v2410_v56 = vmul.f32 -1.442695, %v1702_v55 }
 0x6e0   :  { %2885 = vpow2.f32 %v2409_v22 }
 0x6e1   :  { %2887 = vpow2.f32 %v2410_v56 }
 0x6ea   :  { %v2886_v57 = vpop.eup %2885 }
 0x6eb   :  { %v2888_v58 = vpop.eup %2887  ;;  %v1696_v31 = vadd.f32 1.0, %v2886_v57 }
 0x6ec   :  { %v1706_v59 = vadd.f32 1.0, %v2888_v58 }
 0x6ed   :  { %2889 = vrcp.f32 %v1696_v31 }
 0x6ee   :  { %2891 = vrcp.f32 %v1706_v59 }
 0x6f7   :  { %v2890_v5 = vpop.eup %2889 }
 0x6f8   :  { %v2892_v63 = vpop.eup %2891  ;;  %v1713_v38 = vmul.f32 %v2890_v5, %v1711_v61 }
 0x6f9   :  { %v1721_v39 = vmul.f32 %v2892_v63, %v1719_v62  ;;  %v1716_v23 = vsub.f32 1.0, %v2892_v63 }
 0x6fa   :  { %v1714_v30 = vadd.f32 %v1713_v38, %v3864_v33 }
 0x6fc   :  { %2893 = vtanh.f32 %v1714_v30 }
 0x706   :  { %v2894_v41 = vpop.eup %2893 }
 0x707   :  { %v1717_v27 = vmul.f32 %v2894_v41, %v1716_v23 }
 0x709   :  { %v1722_v43 = vadd.f32 %v1721_v39, %v1717_v27 }
 0x70b   :  { %v4060_v44 = vsel %vm1726_vm12, %v1722_v43, %v1719_v62 }
 0x70c   :  { %v1728_v42 = vpack.c.bf16 %v4060_v44, %v4060_v44  ;;  %v1843_v62 = vrot.slane %v4060_v44, 7 }
 0x70e   :  { %v1730_v45 = vrot.slane %v1728_v42, 2 }
 0x710   :  { %1765 = vmatmul.mubr.bf16.vlgmr.msra.gmra.mrb[24].mxu0 %v1730_v45  ;;  %2653 = vmatmul.mubr.bf16.vlgmr.msra.gmra.mrb[24].mxu1 %v1730_v45 }
 0x711   :  { %1859 = vmatpush1.bf16.msra.mxu0 %v3769_v7  ;;  %2657 = vmatpush3.bf16.msra.mxu1 %v3771_v9 }
 0x712   :  { %1860 = vmatprep.subr.bf16.mxu0 %v3773_v10  ;;  %2658 = vmatprep.subr.bf16.mxu1 %v3351_v1 }
 0x713   :  { %1890 = vmatprep.mubr.bf16.mxu0 %v3353_v8  ;;  %2672 = vmatprep.mubr.msk.bf16.mxu1 %vm3352_vm1, %v3351_v1 }
 0x715   :  { %1861 = vmatpush1.bf16.msra.mxu0 %v3781_v12  ;;  %2659 = vmatpush3.bf16.msra.mxu1 %v3777_v11 }
 0x716   :  { %1862 = vmatprep.subr.bf16.mxu0 %v3784_v13  ;;  %2660 = vmatprep.subr.bf16.mxu1 %v3351_v1 }
 0x719   :  { %1863 = vmatpush1.bf16.msra.mxu0 %v3791_v15  ;;  %2661 = vmatpush3.bf16.msra.mxu1 %v3787_v14 }
 0x71a   :  { %1864 = vmatprep.subr.bf16.mxu0 %v3794_v16  ;;  %2662 = vmatprep.subr.bf16.mxu1 %v3351_v1 }
 0x71d   :  { %1865 = vmatpush1.bf16.msra.mxu0 %v3801_v18  ;;  %2663 = vmatpush3.bf16.msra.mxu1 %v3797_v17 }
 0x71e   :  { %1866 = vmatprep.subr.bf16.mxu0 %v3804_v19  ;;  %2664 = vmatprep.subr.bf16.mxu1 %v3351_v1 }
 0x721   :  { %1867 = vmatpush1.bf16.msra.mxu0 %v3811_v24  ;;  %2665 = vmatpush3.bf16.msra.mxu1 %v3807_v20 }
 0x722   :  { %1868 = vmatprep.subr.bf16.mxu0 %v3814_v25  ;;  %2666 = vmatprep.subr.bf16.mxu1 %v3351_v1 }
 0x725   :  { %1869 = vmatpush1.bf16.msra.mxu0 %v3821_v28  ;;  %2667 = vmatpush3.bf16.msra.mxu1 %v3817_v26 }
 0x726   :  { %1870 = vmatprep.subr.bf16.mxu0 %v3824_v29  ;;  %2668 = vmatprep.subr.bf16.mxu1 %v3351_v1 }
 0x729   :  { %1871 = vmatpush1.bf16.msra.mxu0 %v3831_v34  ;;  %2669 = vmatpush3.bf16.msra.mxu1 %v3827_v32 }
 0x72a   :  { %1872 = vmatprep.subr.bf16.mxu0 %v3834_v35  ;;  %2670 = vmatprep.subr.bf16.mxu1 %v3351_v1 }
 0x72d   :  { %1873 = vmatpush1.bf16.msra.mxu0 %v3841_v37  ;;  %2671 = vmatpush3.bf16.msra.mxu1 %v3837_v36 }
 0x72e   :  { %1982 = vmatprep.subr.bf16.mxu0 %v3767_v2  ;;  %2676 = vmatprep.subr.bf16.mxu1 %v3351_v1 }
 0x7e3   :  { %v1766_v47 = vpop.f32.mrb[24].mxu0  ;;  %v1807_v49 = vpop.f32.mrb[24].mxu1 }
 0x7e4   :  { %v1814_v50 = vrot.slane %v1766_v47, 3  ;;  %v1768_v3 = vpop.f32.mrb[25].mxu0  ;;  %v2654_v4 = vpop.f32.mrb[25].mxu1  ;;  %v1833_v60 = vadd.f32 %v1807_v49, %v3553_v6 }
 0x7e5   :  { %v1824_v51 = vrot.slane %v1768_v3, 3  ;;  %v1770_v52 = vpop.f32.mrb[26].mxu0  ;;  %v1810_v53 = vpop.f32.mrb[26].mxu1  ;;  %v1975_v4 = vstv %s1974_s5 }
 0x7e6   :  { %v1816_v54 = vadd.f32 %v1814_v50, %v3851_v46  ;;  %v1771_v21 = vpop.f32.mrb[27].mxu0  ;;  %v2655_v55 = vpop.f32.mrb[27].mxu1  ;;  %v1835_v61 = vrot.slane %v1833_v60, 3  ;;  %vm1976_vm14 = vcmp.eq.s32.totalorder %v1975_v4, 1  ;;  %v2844_v60 = vld [vmem:[#allocation19 + $0x38] sm:$0xff]  }
 0x7e7   :  { %v1826_v22 = vadd.f32 %v1824_v51, %v3854_v48 }
 0x7e8   :  { %v2411_v56 = vmul.f32 -1.442695, %v1816_v54 }
 0x7e9   :  { %v2412_v57 = vmul.f32 -1.442695, %v1826_v22  ;;  %v2837_v22 = vld [vmem:[#allocation19] sm:$0xff]  }
 0x7ea   :  { %2895 = vpow2.f32 %v2411_v56  ;;  %v2838_v56 = vld [vmem:[#allocation19 + $0x8] sm:$0xff]  }
 0x7eb   :  { %2897 = vpow2.f32 %v2412_v57  ;;  %v2839_v57 = vld [vmem:[#allocation19 + $0x10] sm:$0xff]  }
 0x7f4   :  { %v2896_v2 = vpop.eup %2895 }
 0x7f5   :  { %v2898_v58 = vpop.eup %2897  ;;  %v1820_v31 = vadd.f32 1.0, %v2896_v2  ;;  %v2840_v2 = vld [vmem:[#allocation19 + $0x18] sm:$0xff]  }
 0x7f6   :  { %v1830_v59 = vadd.f32 1.0, %v2898_v58  ;;  %v2841_v58 = vld [vmem:[#allocation19 + $0x20] sm:$0xff]  }
 0x7f7   :  { %2899 = vrcp.f32 %v1820_v31  ;;  %v2842_v31 = vld [vmem:[#allocation19 + $0x28] sm:$0xff]  }
 0x7f8   :  { %2901 = vrcp.f32 %v1830_v59  ;;  %v2843_v59 = vld [vmem:[#allocation19 + $0x30] sm:$0xff]  }
 0x801   :  { %v2900_v5 = vpop.eup %2899 }
 0x802   :  { %v2902_v63 = vpop.eup %2901  ;;  %v1837_v38 = vmul.f32 %v2900_v5, %v1835_v61 }
 0x803   :  { %v1845_v39 = vmul.f32 %v2902_v63, %v1843_v62  ;;  %v1840_v23 = vsub.f32 1.0, %v2902_v63 }
 0x804   :  { %v1838_v30 = vadd.f32 %v1837_v38, %v3864_v33 }
 0x806   :  { %2903 = vtanh.f32 %v1838_v30 }
 0x810   :  { %v2904_v41 = vpop.eup %2903 }
 0x811   :  { %v1841_v27 = vmul.f32 %v2904_v41, %v1840_v23 }
 0x813   :  { %v1846_v43 = vadd.f32 %v1845_v39, %v1841_v27 }
 0x815   :  { %v4107_v42 = vsel %vm1850_vm13, %v1846_v43, %v1843_v62 }
 0x816   :  { %v1852_v44 = vpack.c.bf16 %v4107_v42, %v4107_v42 }
 0x818   :  { %v1854_v45 = vshrl.u32 %v1852_v44, 16 }
 0x81a   :  { %v1856_v47 = vrot.slane %v1854_v45, 2 }
 0x81c   :  { %1891 = vmatmul.mubr.bf16.vlgmr.msra.gmra.mrb[28].mxu0 %v1856_v47  ;;  %2673 = vmatmul.mubr.bf16.vlgmr.msra.gmra.mrb[28].mxu1 %v1856_v47 }
 0x81d   :  { %1983 = vmatpush1.bf16.msra.mxu0 %v3769_v7  ;;  %2677 = vmatpush3.bf16.msra.mxu1 %v3771_v9 }
 0x81e   :  { %1984 = vmatprep.subr.bf16.mxu0 %v3773_v10  ;;  %2678 = vmatprep.subr.bf16.mxu1 %v3351_v1 }
 0x81f   :  { %2014 = vmatprep.mubr.bf16.mxu0 %v3353_v8  ;;  %2692 = vmatprep.mubr.msk.bf16.mxu1 %vm3352_vm1, %v3351_v1 }
 0x821   :  { %1985 = vmatpush1.bf16.msra.mxu0 %v3781_v12  ;;  %2679 = vmatpush3.bf16.msra.mxu1 %v3777_v11 }
 0x822   :  { %1986 = vmatprep.subr.bf16.mxu0 %v3784_v13  ;;  %2680 = vmatprep.subr.bf16.mxu1 %v3351_v1 }
 0x825   :  { %1987 = vmatpush1.bf16.msra.mxu0 %v3791_v15  ;;  %2681 = vmatpush3.bf16.msra.mxu1 %v3787_v14 }
 0x826   :  { %1988 = vmatprep.subr.bf16.mxu0 %v3794_v16  ;;  %2682 = vmatprep.subr.bf16.mxu1 %v3351_v1 }
 0x829   :  { %1989 = vmatpush1.bf16.msra.mxu0 %v3801_v18  ;;  %2683 = vmatpush3.bf16.msra.mxu1 %v3797_v17 }
 0x82a   :  { %1990 = vmatprep.subr.bf16.mxu0 %v3804_v19  ;;  %2684 = vmatprep.subr.bf16.mxu1 %v3351_v1 }
 0x82d   :  { %1991 = vmatpush1.bf16.msra.mxu0 %v3811_v24  ;;  %2685 = vmatpush3.bf16.msra.mxu1 %v3807_v20 }
 0x82e   :  { %1992 = vmatprep.subr.bf16.mxu0 %v3814_v25  ;;  %2686 = vmatprep.subr.bf16.mxu1 %v3351_v1 }
 0x831   :  { %1993 = vmatpush1.bf16.msra.mxu0 %v3821_v28  ;;  %2687 = vmatpush3.bf16.msra.mxu1 %v3817_v26 }
 0x832   :  { %1994 = vmatprep.subr.bf16.mxu0 %v3824_v29  ;;  %2688 = vmatprep.subr.bf16.mxu1 %v3351_v1 }
 0x835   :  { %1995 = vmatpush1.bf16.msra.mxu0 %v3831_v34  ;;  %2689 = vmatpush3.bf16.msra.mxu1 %v3827_v32 }
 0x836   :  { %1996 = vmatprep.subr.bf16.mxu0 %v3834_v35  ;;  %2690 = vmatprep.subr.bf16.mxu1 %v3351_v1  ;;  %v1969_v35 = vrot.slane %v4107_v42, 7 }
 0x839   :  { %1997 = vmatpush1.bf16.msra.mxu0 %v3841_v37  ;;  %2691 = vmatpush3.bf16.msra.mxu1 %v3837_v36 }
 0x83a   :  { %2696 = vmatprep.subr.bf16.mxu0 %v3351_v1 }
 0x8ef   :  { %v1892_v8 = vpop.f32.mrb[28].mxu0  ;;  %v1933_v7 = vpop.f32.mrb[28].mxu1 }
 0x8f0   :  { %v1940_v9 = vrot.slane %v1892_v8, 2  ;;  %v1894_v10 = vpop.f32.mrb[29].mxu0  ;;  %v2674_v11 = vpop.f32.mrb[29].mxu1  ;;  %v1959_v29 = vadd.f32 %v1933_v7, %v3553_v6 }
 0x8f1   :  { %v1950_v12 = vrot.slane %v1894_v10, 2  ;;  %v1896_v13 = vpop.f32.mrb[30].mxu0  ;;  %v1936_v14 = vpop.f32.mrb[30].mxu1 }
 0x8f2   :  { %v1942_v15 = vadd.f32 %v1940_v9, %v3851_v46  ;;  %v1897_v16 = vpop.f32.mrb[31].mxu0  ;;  %v2675_v17 = vpop.f32.mrb[31].mxu1  ;;  %v1961_v32 = vrot.slane %v1959_v29, 2 }
 0x8f3   :  { %v1952_v18 = vadd.f32 %v1950_v12, %v3854_v48 }
 0x8f4   :  { %v2413_v19 = vmul.f32 -1.442695, %v1942_v15  ;;  %v2099_v15 = vstv %s2098_s18 }
 0x8f5   :  { %v2414_v20 = vmul.f32 -1.442695, %v1952_v18  ;;  %vm2100_vm15 = vcmp.eq.s32.totalorder %v2099_v15, 1 }
 0x8f6   :  { %2905 = vpow2.f32 %v2413_v19 }
 0x8f7   :  { %2907 = vpow2.f32 %v2414_v20 }
 0x900   :  { %v2906_v24 = vpop.eup %2905 }
 0x901   :  { %v2908_v25 = vpop.eup %2907  ;;  %v1946_v26 = vadd.f32 1.0, %v2906_v24 }
 0x902   :  { %v1956_v28 = vadd.f32 1.0, %v2908_v25  ;;  %v2214_v25 = vand.u32 127, %v366_v0 }
 0x903   :  { %2909 = vrcp.f32 %v1946_v26 }
 0x904   :  { %2911 = vrcp.f32 %v1956_v28 }
 0x90d   :  { %v2910_v34 = vpop.eup %2909 }
 0x90e   :  { %v2912_v36 = vpop.eup %2911  ;;  %v1963_v37 = vmul.f32 %v2910_v34, %v1961_v32 }
 0x90f   :  { %v1971_v49 = vmul.f32 %v2912_v36, %v1969_v35  ;;  %v1966_v3 = vsub.f32 1.0, %v2912_v36 }
 0x910   :  { %v1964_v50 = vadd.f32 %v1963_v37, %v3864_v33 }
 0x912   :  { %2913 = vtanh.f32 %v1964_v50 }
 0x91c   :  { %v2914_v51 = vpop.eup %2913 }
 0x91d   :  { %v1967_v52 = vmul.f32 %v2914_v51, %v1966_v3 }
 0x91f   :  { %v1972_v53 = vadd.f32 %v1971_v49, %v1967_v52 }
 0x921   :  { %v4153_v54 = vsel %vm1976_vm14, %v1972_v53, %v1969_v35 }
 0x922   :  { %v1978_v21 = vpack.c.bf16 %v4153_v54, %v4153_v54 }
 0x924   :  { %v1980_v55 = vrot.slane %v1978_v21, 3 }
 0x926   :  { %2015 = vmatmul.mubr.bf16.vlgmr.msra.gmra.mrb[32].mxu0 %v1980_v55  ;;  %2693 = vmatmul.mubr.bf16.vlgmr.msra.gmra.mrb[32].mxu1 %v1980_v55 }
 0x927   :  { %2712 = vmatprep.mubr.msk.bf16.mxu0 %vm3352_vm1, %v3351_v1  ;;  %2697 = vmatpush3.bf16.msra.mxu0 %v2837_v22  ;;  %vm2215_vm1 = vcmp.lt.s32.totalorder %v2214_v25, 3 }
 0x928   :  { %2698 = vmatprep.subr.bf16.mxu0 %v3351_v1 }
 0x92b   :  { %2699 = vmatpush3.bf16.msra.mxu0 %v2838_v56 }
 0x92c   :  { %2700 = vmatprep.subr.bf16.mxu0 %v3351_v1 }
 0x92f   :  { %2701 = vmatpush3.bf16.msra.mxu0 %v2839_v57 }
 0x930   :  { %2702 = vmatprep.subr.bf16.mxu0 %v3351_v1 }
 0x933   :  { %2703 = vmatpush3.bf16.msra.mxu0 %v2840_v2 }
 0x934   :  { %2704 = vmatprep.subr.bf16.mxu0 %v3351_v1 }
 0x937   :  { %2705 = vmatpush3.bf16.msra.mxu0 %v2841_v58 }
 0x938   :  { %2706 = vmatprep.subr.bf16.mxu0 %v3351_v1 }
 0x93b   :  { %2707 = vmatpush3.bf16.msra.mxu0 %v2842_v31 }
 0x93c   :  { %2708 = vmatprep.subr.bf16.mxu0 %v3351_v1 }
 0x93f   :  { %2709 = vmatpush3.bf16.msra.mxu0 %v2843_v59 }
 0x940   :  { %2710 = vmatprep.subr.bf16.mxu0 %v3351_v1 }
 0x943   :  { %2711 = vmatpush3.bf16.msra.mxu0 %v2844_v60 }
 0x9f9   :  { %v2016_v61 = vpop.f32.mrb[32].mxu0  ;;  %v2057_v5 = vpop.f32.mrb[32].mxu1 }
 0x9fa   :  { %v2064_v62 = vrot.slane %v2016_v61, 1  ;;  %v2018_v63 = vpop.f32.mrb[33].mxu0  ;;  %v2694_v38 = vpop.f32.mrb[33].mxu1  ;;  %v2083_v7 = vadd.f32 %v2057_v5, %v3553_v6 }
 0x9fb   :  { %v2074_v39 = vrot.slane %v2018_v63, 1  ;;  %v2020_v30 = vpop.f32.mrb[34].mxu0  ;;  %v2060_v23 = vpop.f32.mrb[34].mxu1 }
 0x9fc   :  { %v2066_v40 = vadd.f32 %v2064_v62, %v3851_v46  ;;  %v2021_v41 = vpop.f32.mrb[35].mxu0  ;;  %v2695_v27 = vpop.f32.mrb[35].mxu1  ;;  %v2085_v9 = vrot.slane %v2083_v7, 1  ;;  %v2093_v46 = vrot.slane %v4153_v54, 7 }
 0x9fd   :  { %v2076_v43 = vadd.f32 %v2074_v39, %v3854_v48 }
 0x9fe   :  { %v2415_v42 = vmul.f32 -1.442695, %v2066_v40 }
 0x9ff   :  { %v2416_v44 = vmul.f32 -1.442695, %v2076_v43 }
 0xa00   :  { %2915 = vpow2.f32 %v2415_v42 }
 0xa01   :  { %2917 = vpow2.f32 %v2416_v44 }
 0xa0a   :  { %v2916_v1 = vpop.eup %2915 }
 0xa0b   :  { %v2918_v45 = vpop.eup %2917  ;;  %v2070_v47 = vadd.f32 1.0, %v2916_v1 }
 0xa0c   :  { %v2080_v8 = vadd.f32 1.0, %v2918_v45 }
 0xa0d   :  { %2919 = vrcp.f32 %v2070_v47 }
 0xa0e   :  { %2921 = vrcp.f32 %v2080_v8 }
 0xa17   :  { %v2920_v10 = vpop.eup %2919 }
 0xa18   :  { %v2922_v11 = vpop.eup %2921  ;;  %v2087_v12 = vmul.f32 %v2920_v10, %v2085_v9 }
 0xa19   :  { %v2095_v13 = vmul.f32 %v2922_v11, %v2093_v46  ;;  %v2090_v14 = vsub.f32 1.0, %v2922_v11 }
 0xa1a   :  { %v2088_v48 = vadd.f32 %v2087_v12, %v3864_v33  ;;  %v2119_v33 = vld [vmem:[#allocation20] sm:$0x1] }
 0xa1c   :  { %2923 = vtanh.f32 %v2088_v48 }
 0xa26   :  { %v2924_v16 = vpop.eup %2923 }
 0xa27   :  { %v2091_v17 = vmul.f32 %v2924_v16, %v2090_v14 }
 0xa29   :  { %v2096_v6 = vadd.f32 %v2095_v13, %v2091_v17 }
 0xa2b   :  { %v2101_v18 = vsel %vm2100_vm15, %v2096_v6, %v2093_v46 }
 0xa2c   :  { %v2102_v19 = vpack.c.bf16 %v2101_v18, %v2101_v18  ;;  %v2230_v34 = vrot.slane %v2101_v18, 7 }
 0xa2e   :  { %v2121_v20 = vshrl.u32 %v2102_v19, 16 }
 0xa30   :  { %v2123_v24 = vrot.slane %v2121_v20, 3 }
 0xa32   :  { %2713 = vmatmul.mubr.bf16.vlgmr.msra.gmra.mrb[36].mxu0 %v2123_v24 }
 0xb05   :  { %v2207_v26 = vpop.f32.mrb[36].mxu0 }
 0xb06   :  { %v2208_v28 = vadd.f32 %v2207_v26, %v2119_v33  ;;  %v2714_v29 = vpop.f32.mrb[37].mxu0 }
 0xb07   :  { %v2210_v32 = vpop.f32.mrb[38].mxu0 }
 0xb08   :  { %v2233_v35 = vrot.slane %v2208_v28, 7  ;;  %v2715_v36 = vpop.f32.mrb[39].mxu0  ;;  %v2216_v37 = vsel %vm2215_vm1, %v2208_v28, -1e+30 }
 0xb09   :  { %v2217_v49 = vsel %vm493_vm0, %v2216_v37, -inf }
 0xb0a   :  { %v2238_v50 = vsel %vm493_vm0, %v2230_v34, %v2233_v35  ;;  %2218 = vmax.xlane.f32.xlu0 %v2217_v49 }
 0xb97   :  { %v2219_v3 = vpop.xlane.xlu0 %2218 }
 0xb98   :  { %v2220_v4 = vsub.f32 %v2216_v37, %v2219_v3 }
 0xb9a   :  { %v2221_v51 = vmul.f32 1.442695, %v2220_v4 }
 0xb9c   :  { %2925 = vpow2.f32 %v2221_v51 }
 0xba6   :  { %v2926_v0 = vpop.eup %2925 }
 0xba7   :  { %v2223_v52 = vsel %vm493_vm0, %v2926_v0, 0.0 }
 0xba8   :  { %2224 = vadd.xlane.f32.xlu0 %v2223_v52 }
 0xc35   :  { %v2225_v53 = vpop.xlane.xlu0 %2224 }
 0xc36   :  { %2927 = vlog2.f32 %v2225_v53 }
 0xc40   :  { %v2928_v54 = vpop.eup %2927 }
 0xc41   :  { %v2227_v21 = vmul.f32 0.6931472, %v2928_v54 }
 0xc43   :  { %v2228_v55 = vsub.f32 %v2220_v4, %v2227_v21 }
 0xc45   :  { %v2236_v22 = vrot.slane %v2228_v55, 6 }
 0xc47   :  { %v2239_v56 = vsel %vm497_vm2, %v2238_v50, %v2236_v22 }
 0xc48   :  { %v2240_v57 = vsel %vm501_vm3, %v2239_v56, 0.0 }
 0xc49   :  { %2241 = vst [vmem:[%s4195_s12] sm:$0xff] %v2240_v57 }
 0xc4a   :  { %2246 = vsyncpa [#allocation6], 1 }
 0xc4b   :  { %2247 = vsyncpa [#allocation12], 1 }
 0xc4c   :  { %2248 = vsyncpa [#allocation15], 1 }
 0xc4d   :  { %2249 = vsyncpa [#allocation18], 1 }
 0xc4e   :  { %2250 = vsyncpa [#allocation21], 1 }
 0xc4f   :  { %2251 = vsyncpa [#allocation7], 1 }
 0xc50   :  { %2252 = vsyncpa [#allocation9], 1 }
 0xc51   :  { %2253 = vsyncmov [#allocation3] }
 0xc54   :  { %s2254_s19 = vpop.sfrf %2253 }
 0xc55   :  { %p2425_p10 = scmp.ne.s32.totalorder %s2254_s19, 0 }
 0xc57   :  { %2258 = shalt.err (%p2425_p10)  }

</bundles_post_ra>
